<compile_context>
chip_gen: v5e
topology: v5e:2x2
jax: 0.10.0
libtpu: 0.0.40
codegen_flags: <defaults>
</compile_context>

<pallas_src>
import functools

import jax
import jax.numpy as jnp
import numpy as np
from jax import lax
from jax.experimental import pallas as pl
from jax.experimental.pallas import tpu as pltpu

F32 = jnp.float32
BF16 = jnp.bfloat16
EPS = 1e-8
# TODO(synk): re-derive the budget for v7x (64 MiB physical VMEM) and tile d_ff
# when production-size FF weights no longer fit resident.
_VMEM_LIMIT = 32 * 1024 * 1024


# ---------------------------------------------------------------------------
# in-kernel helpers
# ---------------------------------------------------------------------------
def _rms_normalize(x, scale, dim_norm):
    """x: (R, D) f32, scale: (1, D) f32.  Faithful to torch RMSNorm:
    rms = ||x||_2 * d**-0.5 ;  y = scale * x / (rms + eps)."""
    ssq = jnp.sum(x * x, axis=-1, keepdims=True)
    rms = jnp.sqrt(ssq) * dim_norm
    return x * (1.0 / (rms + EPS)) * scale


def _gelu_tanh(x):
    # TODO(synk): torch nn.GELU defaults to the exact erf form; the tanh
    # approximation (~1e-3) is used here and in the JAX reference.
    c = 0.7978845608028654  # sqrt(2/pi)
    return 0.5 * x * (1.0 + jnp.tanh(c * (x + 0.044715 * x * x * x)))


def _mha_core(q2d, k2d, v2d, a2d, p1, p2, kposT, *, bt, n, m, H, d_qk, d_v, d_pos):
    """Multi-head attention core on lane-packed projections.

    q2d : (bt*n, H*d_qk) f32    a2d : (bt*n, H*d_pos) f32 (pos-enc projection of q)
    k2d : (bt*m, H*d_qk) f32    p1/p2 : (n, d_pos) f32,  kposT : (2*d_pos, m) bf16
    v2d : (bt*m, H*d_v)  f32
    returns (bt*n, H*d_v) f32.

    Heads are an unrolled python loop; each head uses only 2-D matmuls and
    leading-batch 3-D einsums (the forms known to lower cleanly on Mosaic).
    TODO(synk): fold the head loop into a (batch, head)-batched dot_general once
    multi-batch-dim dot lowering is confirmed for the target jaxlib.
    """
    head_outs = []
    for h in range(H):
        qh = q2d[:, h * d_qk:(h + 1) * d_qk].reshape(bt, n, d_qk).astype(BF16)
        kh = k2d[:, h * d_qk:(h + 1) * d_qk].reshape(bt, m, d_qk).astype(BF16)
        vh = v2d[:, h * d_v:(h + 1) * d_v].reshape(bt, m, d_v).astype(BF16)
        ah = a2d[:, h * d_pos:(h + 1) * d_pos].reshape(bt, n, d_pos)

        # relative positional logits via the angle-difference identity:
        #   pos[n,m] = sum_c [a*p1, a*p2][n,c] * [cos(mw),cos(mw),sin(mw),sin(mw)][m,c]
        u = jnp.concatenate([ah * p1[None], ah * p2[None]], axis=-1)     # (bt, n, 2*d_pos)
        pos = jnp.dot(u.reshape(bt * n, 2 * d_pos).astype(BF16), kposT,
                      preferred_element_type=F32).reshape(bt, n, m)

        content = jnp.einsum('bnd,bmd->bnm', qh, kh,
                             preferred_element_type=F32)                 # (bt, n, m)
        logits = content + pos                                           # non-causal, no mask

        lmax = jnp.max(logits, axis=-1, keepdims=True)
        e = jnp.exp(logits - lmax)
        w = e * pl.reciprocal(jnp.sum(e, axis=-1, keepdims=True), approx=True)

        attn = jnp.einsum('bnm,bmd->bnd', w.astype(BF16), vh,
                          preferred_element_type=F32)                    # (bt, n, d_v)
        head_outs.append(attn.reshape(bt * n, d_v))
    return jnp.concatenate(head_outs, axis=-1)                           # (bt*n, H*d_v)


# ---------------------------------------------------------------------------
# fused per-layer kernel:
#   y = sa(y) ; [y = ca(y, x_chunked)] ; y = ff(y) ; [y = final_norm(y)]
# ---------------------------------------------------------------------------
def _encoder_layer_kernel(*refs, H, d_qk, d_v, has_ca, fuse_final, dim_norm):
    it = iter(refs)
    y_ref = next(it)
    xkv_ref = next(it) if has_ca else None
    sa_scale, sa_w, sa_wo, sa_p1, sa_p2, sa_kT = (next(it) for _ in range(6))
    if has_ca:
        ca_scale, ca_wq, ca_wkv, ca_wo, ca_p1, ca_p2, ca_kT = (next(it) for _ in range(7))
    ff_scale, w1, b1, w2, b2 = (next(it) for _ in range(5))
    fin_scale = next(it) if fuse_final else None
    o_ref = next(it)

    bt, n, D = y_ref.shape
    R = bt * n
    y = y_ref[...].reshape(R, D)                                         # f32 residual stream

    # ---- self-attention block (keys/values come from the normed queries)
    xn16 = _rms_normalize(y, sa_scale[...], dim_norm).astype(BF16)
    proj = jnp.dot(xn16, sa_w[...], preferred_element_type=F32)          # (R, H*(2dqk+dv)+H*D)
    c0 = H * d_qk
    c1 = 2 * H * d_qk
    c2 = c1 + H * d_v
    attn = _mha_core(proj[:, :c0], proj[:, c0:c1], proj[:, c1:c2], proj[:, c2:],
                     sa_p1[...], sa_p2[...], sa_kT[...],
                     bt=bt, n=n, m=n, H=H, d_qk=d_qk, d_v=d_v, d_pos=D)
    y = y + jnp.dot(attn.astype(BF16), sa_wo[...], preferred_element_type=F32)

    # ---- cross-attention block (kv = raw chunked decoder states, NOT normed)
    if has_ca:
        mc, d_dec = xkv_ref.shape[1], xkv_ref.shape[2]
        xkv16 = xkv_ref[...].reshape(bt * mc, d_dec)                     # bf16 (pre-cast)
        xn16 = _rms_normalize(y, ca_scale[...], dim_norm).astype(BF16)
        qproj = jnp.dot(xn16, ca_wq[...], preferred_element_type=F32)    # (R, H*dqk + H*ddec)
        kvproj = jnp.dot(xkv16, ca_wkv[...], preferred_element_type=F32)  # (bt*mc, H*(dqk+dv))
        attn = _mha_core(qproj[:, :H * d_qk], kvproj[:, :H * d_qk],
                         kvproj[:, H * d_qk:], qproj[:, H * d_qk:],
                         ca_p1[...], ca_p2[...], ca_kT[...],
                         bt=bt, n=n, m=mc, H=H, d_qk=d_qk, d_v=d_v, d_pos=d_dec)
        y = y + jnp.dot(attn.astype(BF16), ca_wo[...], preferred_element_type=F32)

    # ---- feed-forward block
    xn16 = _rms_normalize(y, ff_scale[...], dim_norm).astype(BF16)
    hmid = jnp.dot(xn16, w1[...], preferred_element_type=F32) + b1[...]
    hmid = _gelu_tanh(hmid)
    y = y + jnp.dot(hmid.astype(BF16), w2[...], preferred_element_type=F32) + b2[...]

    # ---- final encoder RMSNorm, fused into the last layer only
    if fuse_final:
        y = _rms_normalize(y, fin_scale[...], dim_norm)

    o_ref[...] = y.reshape(bt, n, D)


# ---------------------------------------------------------------------------
# host-side packing (hoisted: done once per forward, outside the layer loop)
# ---------------------------------------------------------------------------
def _pos_tables(n_q, n_k, d_pos):
    """Trig tables for the decomposed relative-position logits.
    p1/p2: (n_q, d_pos) f32 query-side, kposT: (2*d_pos, n_k) bf16 key-side."""
    assert d_pos % 2 == 0
    inv_freq = 1.0 / (10000.0 ** (jnp.arange(0.0, d_pos, 2.0, dtype=F32) / d_pos))
    qa = jnp.arange(n_q, dtype=F32)[:, None] * inv_freq[None, :]
    ka = jnp.arange(n_k, dtype=F32)[:, None] * inv_freq[None, :]
    p1 = jnp.concatenate([jnp.sin(qa), jnp.cos(qa)], axis=-1)
    p2 = jnp.concatenate([-jnp.cos(qa), jnp.sin(qa)], axis=-1)
    k1 = jnp.concatenate([jnp.cos(ka), jnp.cos(ka)], axis=-1)
    k2 = jnp.concatenate([jnp.sin(ka), jnp.sin(ka)], axis=-1)
    kposT = jnp.concatenate([k1, k2], axis=-1).T                         # (2*d_pos, n_k)
    return p1, p2, kposT.astype(BF16)


def _pack_attention_weights(p, H):
    """Lane-dense 2-D weight layouts; the PE projection is folded through to_q."""
    to_q, to_kv, wpe, to_o = p['to_q'], p['to_kv'], p['for_pos_enc'], p['to_o']
    d_qk = to_q.shape[1]
    d_v = to_kv.shape[1] - d_qk
    d_x_q, d_x_kv, d_out = to_q.shape[2], to_kv.shape[2], to_o.shape[0]
    wq = jnp.transpose(to_q, (2, 0, 1)).reshape(d_x_q, H * d_qk)
    wk = jnp.transpose(to_kv[:, :d_qk, :], (2, 0, 1)).reshape(d_x_kv, H * d_qk)
    wv = jnp.transpose(to_kv[:, d_qk:, :], (2, 0, 1)).reshape(d_x_kv, H * d_v)
    wa = jnp.transpose(jnp.einsum('hdc,hdb->hcb', to_q, wpe),
                       (1, 0, 2)).reshape(d_x_q, H * d_x_kv)
    wo = jnp.transpose(to_o, (1, 2, 0)).reshape(H * d_v, d_out)
    return dict(wq=wq, wk=wk, wv=wv, wa=wa, wo=wo)


def _pick_block_batch(bk, n, target_rows=512):
    """Largest divisor of the kv-batch extent keeping ~target_rows rows per block."""
    best = 1
    for bt in range(1, bk + 1):
        if bk % bt == 0 and bt * n <= target_rows:
            best = bt
    return best


# ---------------------------------------------------------------------------
# per-layer pallas_call wrapper
# ---------------------------------------------------------------------------
def _encoder_layer_pallas(y, x_kv16, lw, *, num_heads, d_qk, d_v, fuse_final, bt):
    BF, N, D = y.shape
    has_ca = x_kv16 is not None

    kernel = functools.partial(
        _encoder_layer_kernel, H=num_heads, d_qk=d_qk, d_v=d_v,
        has_ca=has_ca, fuse_final=fuse_final, dim_norm=D ** (-0.5))

    if has_ca:
        BK, Mc, Ddec = x_kv16.shape
        bkb = BK // bt
        rep = BF // BK
        # KV axis outermost, neighbour axis innermost -> the shared KV block
        # keeps the same block index across consecutive steps (DMA'd once).
        grid = (bkb, rep)
        y_map = lambda j, i: (i * bkb + j, 0, 0)
        kv_map = lambda j, i: (j, 0, 0)
        c2 = lambda j, i: (0, 0)
        dims = ("parallel", "parallel")
    else:
        grid = (BF // bt,)
        y_map = lambda g: (g, 0, 0)
        c2 = lambda g: (0, 0)
        dims = ("parallel",)

    arrays = [y]
    specs = [pl.BlockSpec((bt, N, D), y_map)]
    if has_ca:
        arrays.append(x_kv16)
        specs.append(pl.BlockSpec((bt, Mc, Ddec), kv_map))

    # TODO(synk): constant-index operands below could be single-buffered with
    # pipeline_mode=pl.Buffered(1) to halve their VMEM footprint on v7x.
    def add(arr):
        arrays.append(arr)
        specs.append(pl.BlockSpec(arr.shape, c2))

    sa = lw['sa']
    for a in (sa['scale'], sa['w'], sa['wo'], sa['p1'], sa['p2'], sa['kT']):
        add(a)
    if has_ca:
        ca = lw['ca']
        for a in (ca['scale'], ca['wq'], ca['wkv'], ca['wo'],
                  ca['p1'], ca['p2'], ca['kT']):
            add(a)
    ff = lw['ff']
    for a in (ff['scale'], ff['w1'], ff['b1'], ff['w2'], ff['b2']):
        add(a)
    if fuse_final:
        add(lw['final_scale'])

    return pl.pallas_call(
        kernel,
        out_shape=jax.ShapeDtypeStruct((BF, N, D), F32),
        grid_spec=pltpu.PrefetchScalarGridSpec(
            num_scalar_prefetch=0, grid=grid, in_specs=specs,
            out_specs=pl.BlockSpec((bt, N, D), y_map)),
        compiler_params=pltpu.CompilerParams(
            dimension_semantics=dims, vmem_limit_bytes=_VMEM_LIMIT),
    )(*arrays)


# ---------------------------------------------------------------------------
# Encoder forward (Pallas).  Layout glue (chunkenize / flatten) is plain JAX.
# ---------------------------------------------------------------------------
def chunkenize_jax(x, chunk_size):
    """x: (L, B, D) -> (chunk_size, L//chunk_size, B, D). Residue/cache omitted."""
    L = x.shape[0]
    t = L - L % chunk_size
    xt = x[:t]
    chunked = xt.reshape(-1, chunk_size, *x.shape[1:])     # (LC, C, B, D)
    chunked = jnp.swapaxes(chunked, 0, 1)                  # (C, LC, B, D)
    residue = x[t:] if (L - t) > 0 else None
    return chunked, residue


def encoder_forward_pallas(y, x, params, *, num_heads, chunk_size, ca_layers):
    # y: (Cp, Nn, LC, B, D)  (torch layout: sequence first), x: (L, B, D_dec)
    Cp, Nn, LC, B, D = y.shape
    x_chunked, _ = chunkenize_jax(x, chunk_size)            # (C, LC, B, Ddec)
    C, LCx, Bx, Ddec = x_chunked.shape
    assert LCx == LC and Bx == B

    # batch-first flattening for the kernels; cross-attn KV pre-cast to bf16
    yb = jnp.transpose(y, (1, 2, 3, 0, 4)).reshape(Nn * LC * B, Cp, D)
    xb16 = jnp.transpose(x_chunked, (1, 2, 0, 3)).reshape(LC * B, C, Ddec).astype(BF16)

    H = num_heads
    num_layers = len(params['sa'])
    d_qk = params['sa'][0]['to_q'].shape[1]
    d_v = params['sa'][0]['to_kv'].shape[1] - d_qk

    # hoisted: trig tables (shared by every layer) and packed/cast weights
    p1_sa, p2_sa, kT_sa = _pos_tables(Cp, Cp, D)
    p1_ca, p2_ca, kT_ca = _pos_tables(Cp, C, Ddec)
    bt = _pick_block_batch(LC * B, Cp)

    layer_weights = []
    for i in range(num_layers):
        lw = {}
        s = _pack_attention_weights(params['sa'][i], H)
        lw['sa'] = dict(
            scale=params['sa'][i]['scale'].reshape(1, D).astype(F32),
            w=jnp.concatenate([s['wq'], s['wk'], s['wv'], s['wa']], axis=1).astype(BF16),
            wo=s['wo'].astype(BF16), p1=p1_sa, p2=p2_sa, kT=kT_sa)
        if i in ca_layers:
            c = _pack_attention_weights(params['ca'][i], H)
            lw['ca'] = dict(
                scale=params['ca'][i]['scale'].reshape(1, D).astype(F32),
                wq=jnp.concatenate([c['wq'], c['wa']], axis=1).astype(BF16),
                wkv=jnp.concatenate([c['wk'], c['wv']], axis=1).astype(BF16),
                wo=c['wo'].astype(BF16), p1=p1_ca, p2=p2_ca, kT=kT_ca)
        fp = params['ff'][i]
        d_ff = fp['w1'].shape[0]
        lw['ff'] = dict(scale=fp['scale'].reshape(1, D).astype(F32),
                        w1=jnp.transpose(fp['w1']).astype(BF16),
                        b1=fp['b1'].reshape(1, d_ff).astype(F32),
                        w2=jnp.transpose(fp['w2']).astype(BF16),
                        b2=fp['b2'].reshape(1, D).astype(F32))
        if i == num_layers - 1:
            lw['final_scale'] = params['final_scale'].reshape(1, D).astype(F32)
        layer_weights.append(lw)

    for i in range(num_layers):
        xkv = xb16 if i in ca_layers else None
        yb = _encoder_layer_pallas(yb, xkv, layer_weights[i],
                                   num_heads=H, d_qk=d_qk, d_v=d_v,
                                   fuse_final=(i == num_layers - 1), bt=bt)

    # back to the torch layout (Cp, Nn, LC, B, D)
    return jnp.transpose(yb.reshape(Nn, LC, B, Cp, D), (3, 0, 1, 2, 4))


# ---------------------------------------------------------------------------
# Pure-JAX reference mirroring the PyTorch forward (gather-based positional
# encoding) — used to verify the kernels.
# ---------------------------------------------------------------------------
def _rmsnorm_ref(x, scale):
    d = x.shape[-1]
    rms = jnp.sqrt(jnp.sum(x * x, axis=-1, keepdims=True)) * d ** (-0.5)
    return scale * (x / (rms + EPS))


def _pos_enc_ref(for_pos_enc, n, m, offset, d_x_kv):
    dists = jnp.arange(n)[:, None] - jnp.arange(m)[None, :] + offset
    dmin, dmax = offset - (m - 1), offset + (n - 1)
    r = jnp.arange(dmin, dmax + 1).astype(F32)
    inv_freq = 1.0 / (10000.0 ** (jnp.arange(0.0, d_x_kv, 2.0, dtype=F32) / d_x_kv))
    phases = r[:, None] * inv_freq[None, :]
    sincos = jnp.concatenate([jnp.sin(phases), jnp.cos(phases)], axis=-1)
    pos_enc = jnp.einsum('hdb,rb->rhd', for_pos_enc, sincos)
    return pos_enc[dists - dmin]                             # (n, m, H, dqk)


def _attention_block_ref(x_q, x_kv, p):
    d_qk = p['to_q'].shape[1]
    d_x_kv = p['to_kv'].shape[-1]
    xn = _rmsnorm_ref(x_q, p['scale'])
    q = jnp.einsum('hdb,nijkb->nijkhd', p['to_q'], xn)
    if x_kv is None:
        kv = jnp.einsum('hdb,mijkb->mijkhd', p['to_kv'], xn)
    else:
        kv = jnp.einsum('hdb,mjkb->mjkhd', p['to_kv'], x_kv)
        kv = jnp.broadcast_to(kv[:, None],
                              (kv.shape[0], x_q.shape[1]) + kv.shape[1:])
    k, v = kv[..., :d_qk], kv[..., d_qk:]
    pe = _pos_enc_ref(p['for_pos_enc'], q.shape[0], k.shape[0], 0, d_x_kv)
    content = jnp.einsum('nijkhd,mijkhd->nmijkh', q, k)
    pos = jnp.einsum('nijkhd,nmhd->nmijkh', q, pe)
    w = jax.nn.softmax(content + pos, axis=1)
    attn = jnp.einsum('nmijkh,mijkhd->nijkhd', w, v)
    out = jnp.einsum('dhb,nijkhb->nijkd', p['to_o'], attn)
    return x_q + out


def _ff_block_ref(x, p):
    xn = _rmsnorm_ref(x, p['scale'])
    h = jnp.einsum('...d,fd->...f', xn, p['w1']) + p['b1']
    c = 0.7978845608028654
    h = 0.5 * h * (1.0 + jnp.tanh(c * (h + 0.044715 * h * h * h)))
    return x + jnp.einsum('...f,df->...d', h, p['w2']) + p['b2']


def encoder_forward_ref(y, x, params, *, chunk_size, ca_layers):
    x_chunked, _ = chunkenize_jax(x, chunk_size)
    out = y
    for i in range(len(params['sa'])):
        out = _attention_block_ref(out, None, params['sa'][i])
        if i in ca_layers:
            out = _attention_block_ref(out, x_chunked, params['ca'][i])
        out = _ff_block_ref(out, params['ff'][i])
    return _rmsnorm_ref(out, params['final_scale'])


# ---------------------------------------------------------------------------
if __name__ == "__main__":
    num_layers = 2
    D, D_DEC, D_FF, H = 32, 48, 64, 4
    CHUNK, L, B, NN, CP = 4, 8, 2, 2, 8   # chunk size, dec len, batch, neighbours, enc seq
    ca_layers = (1,)
    d_qk = d_v = D // H

    key = jax.random.PRNGKey(0)
    keys = iter(jax.random.split(key, 64))

    def nrm(shape, scl=0.1):
        return scl * jax.random.normal(next(keys), shape, F32)

    def make_attn_params(d_x_kv):
        return dict(scale=jnp.ones((D,), F32),
                    to_q=nrm((H, d_qk, D)),
                    to_kv=nrm((H, d_qk + d_v, d_x_kv)),
                    for_pos_enc=nrm((H, d_qk, d_x_kv)),
                    to_o=nrm((D, H, d_v)))

    def make_ff_params():
        return dict(scale=jnp.ones((D,), F32),
                    w1=nrm((D_FF, D)), b1=nrm((D_FF,)),
                    w2=nrm((D, D_FF)), b2=nrm((D,)))

    params = dict(
        sa=[make_attn_params(D) for _ in range(num_layers)],
        ca=[make_attn_params(D_DEC) if i in ca_layers else None
            for i in range(num_layers)],
        ff=[make_ff_params() for _ in range(num_layers)],
        final_scale=jnp.ones((D,), F32),
    )

    y = jax.random.normal(next(keys), (CP, NN, L // CHUNK, B, D), F32)
    x = jax.random.normal(next(keys), (L, B, D_DEC), F32)

    out = encoder_forward_pallas(y, x, params, num_heads=H,
                                 chunk_size=CHUNK, ca_layers=ca_layers)
    out = jax.block_until_ready(out)

    ref = encoder_forward_ref(y, x, params, chunk_size=CHUNK, ca_layers=ca_layers)
    ref = jax.block_until_ready(ref)

    # bf16 MXU operands (f32 accumulation) across several residual blocks
    # account for the tolerance.
    np.testing.assert_allclose(np.asarray(out), np.asarray(ref),
                               rtol=5e-2, atol=5e-2)
    print("KERNEL_OK")
</pallas_src>

<mosaic_0001>
module attributes {stable_mosaic.version = 11 : i64} {
  func.func @_encoder_layer_kernel(%arg0: i32, %arg1: memref<4x8x32xf32, #tpu.memory_space<vmem>>, %arg2: memref<1x32xf32, #tpu.memory_space<vmem>>, %arg3: memref<32x224xbf16, #tpu.memory_space<vmem>>, %arg4: memref<32x32xbf16, #tpu.memory_space<vmem>>, %arg5: memref<8x32xf32, #tpu.memory_space<vmem>>, %arg6: memref<8x32xf32, #tpu.memory_space<vmem>>, %arg7: memref<64x8xbf16, #tpu.memory_space<vmem>>, %arg8: memref<1x32xf32, #tpu.memory_space<vmem>>, %arg9: memref<32x64xbf16, #tpu.memory_space<vmem>>, %arg10: memref<1x64xf32, #tpu.memory_space<vmem>>, %arg11: memref<64x32xbf16, #tpu.memory_space<vmem>>, %arg12: memref<1x32xf32, #tpu.memory_space<vmem>>, %arg13: memref<4x8x32xf32, #tpu.memory_space<vmem>>) attributes {dimension_semantics = [#tpu.dimension_semantics<parallel>], iteration_bounds = array<i64: 2>, scalar_prefetch = 0 : i64, scratch_operands = 0 : i64, tpu.core_type = #tpu.core_type<tc>, window_params = [{transform_indices = @transform_0, window_bounds = array<i64: 4, 8, 32>}, {pipeline_mode = #tpu.pipeline_mode<synchronous>, transform_indices = @transform_1, window_bounds = array<i64: 1, 32>}, {pipeline_mode = #tpu.pipeline_mode<synchronous>, transform_indices = @transform_2, window_bounds = array<i64: 32, 224>}, {pipeline_mode = #tpu.pipeline_mode<synchronous>, transform_indices = @transform_3, window_bounds = array<i64: 32, 32>}, {pipeline_mode = #tpu.pipeline_mode<synchronous>, transform_indices = @transform_4, window_bounds = array<i64: 8, 32>}, {pipeline_mode = #tpu.pipeline_mode<synchronous>, transform_indices = @transform_5, window_bounds = array<i64: 8, 32>}, {pipeline_mode = #tpu.pipeline_mode<synchronous>, transform_indices = @transform_6, window_bounds = array<i64: 64, 8>}, {pipeline_mode = #tpu.pipeline_mode<synchronous>, transform_indices = @transform_7, window_bounds = array<i64: 1, 32>}, {pipeline_mode = #tpu.pipeline_mode<synchronous>, transform_indices = @transform_8, window_bounds = array<i64: 32, 64>}, {pipeline_mode = #tpu.pipeline_mode<synchronous>, transform_indices = @transform_9, window_bounds = array<i64: 1, 64>}, {pipeline_mode = #tpu.pipeline_mode<synchronous>, transform_indices = @transform_10, window_bounds = array<i64: 64, 32>}, {pipeline_mode = #tpu.pipeline_mode<synchronous>, transform_indices = @transform_11, window_bounds = array<i64: 1, 32>}, {transform_indices = @transform_12, window_bounds = array<i64: 4, 8, 32>}]} {
    %c0 = arith.constant 0 : index
    %c0_0 = arith.constant 0 : index
    %c0_1 = arith.constant 0 : index
    %0 = vector.load %arg1[%c0, %c0_0, %c0_1] : memref<4x8x32xf32, #tpu.memory_space<vmem>>, vector<4x8x32xf32>
    %1 = vector.shape_cast %0 : vector<4x8x32xf32> to vector<32x32xf32>
    %c0_2 = arith.constant 0 : index
    %c0_3 = arith.constant 0 : index
    %2 = vector.load %arg2[%c0_2, %c0_3] : memref<1x32xf32, #tpu.memory_space<vmem>>, vector<1x32xf32>
    %3 = arith.mulf %1, %1 : vector<32x32xf32>
    %cst = arith.constant dense<0.000000e+00> : vector<32xf32>
    %4 = vector.multi_reduction <add>, %3, %cst [1] : vector<32x32xf32> to vector<32xf32>
    %5 = vector.shape_cast %4 : vector<32xf32> to vector<32x1xf32>
    %6 = math.sqrt %5 : vector<32x1xf32>
    %cst_4 = arith.constant 0.176776692 : f32
    %7 = vector.broadcast %cst_4 : f32 to vector<32x1xf32>
    %8 = arith.mulf %6, %7 : vector<32x1xf32>
    %cst_5 = arith.constant 9.99999993E-9 : f32
    %9 = vector.broadcast %cst_5 : f32 to vector<32x1xf32>
    %10 = arith.addf %8, %9 : vector<32x1xf32>
    %cst_6 = arith.constant 1.000000e+00 : f32
    %11 = vector.broadcast %cst_6 : f32 to vector<32x1xf32>
    %12 = arith.divf %11, %10 : vector<32x1xf32>
    %13 = vector.broadcast %12 : vector<32x1xf32> to vector<32x32xf32>
    %14 = arith.mulf %1, %13 : vector<32x32xf32>
    %15 = vector.broadcast %2 : vector<1x32xf32> to vector<32x32xf32>
    %16 = arith.mulf %14, %15 : vector<32x32xf32>
    %17 = arith.truncf %16 : vector<32x32xf32> to vector<32x32xbf16>
    %c0_7 = arith.constant 0 : index
    %c0_8 = arith.constant 0 : index
    %18 = vector.load %arg3[%c0_7, %c0_8] : memref<32x224xbf16, #tpu.memory_space<vmem>>, vector<32x224xbf16>
    %cst_9 = arith.constant dense<0.000000e+00> : vector<32x224xf32>
    %19 = tpu.matmul %17, %18, %cst_9 {dimension_numbers = #tpu.dot_dimension_numbers<[1], [0], [0], [1], [0, 0, 1, 1], [], []>} : vector<32x32xbf16>, vector<32x224xbf16>, vector<32x224xf32> -> vector<32x224xf32>
    %20 = vector.extract_strided_slice %19 {offsets = [0, 0], sizes = [32, 32], strides = [1, 1]} : vector<32x224xf32> to vector<32x32xf32>
    %21 = vector.extract_strided_slice %19 {offsets = [0, 32], sizes = [32, 32], strides = [1, 1]} : vector<32x224xf32> to vector<32x32xf32>
    %22 = vector.extract_strided_slice %19 {offsets = [0, 64], sizes = [32, 32], strides = [1, 1]} : vector<32x224xf32> to vector<32x32xf32>
    %23 = vector.extract_strided_slice %19 {offsets = [0, 96], sizes = [32, 128], strides = [1, 1]} : vector<32x224xf32> to vector<32x128xf32>
    %c0_10 = arith.constant 0 : index
    %c0_11 = arith.constant 0 : index
    %24 = vector.load %arg5[%c0_10, %c0_11] : memref<8x32xf32, #tpu.memory_space<vmem>>, vector<8x32xf32>
    %c0_12 = arith.constant 0 : index
    %c0_13 = arith.constant 0 : index
    %25 = vector.load %arg6[%c0_12, %c0_13] : memref<8x32xf32, #tpu.memory_space<vmem>>, vector<8x32xf32>
    %c0_14 = arith.constant 0 : index
    %c0_15 = arith.constant 0 : index
    %26 = vector.load %arg7[%c0_14, %c0_15] : memref<64x8xbf16, #tpu.memory_space<vmem>>, vector<64x8xbf16>
    %27 = vector.extract_strided_slice %20 {offsets = [0, 0], sizes = [32, 8], strides = [1, 1]} : vector<32x32xf32> to vector<32x8xf32>
    %28 = vector.shape_cast %27 : vector<32x8xf32> to vector<4x8x8xf32>
    %29 = arith.truncf %28 : vector<4x8x8xf32> to vector<4x8x8xbf16>
    %30 = vector.extract_strided_slice %21 {offsets = [0, 0], sizes = [32, 8], strides = [1, 1]} : vector<32x32xf32> to vector<32x8xf32>
    %31 = vector.shape_cast %30 : vector<32x8xf32> to vector<4x8x8xf32>
    %32 = arith.truncf %31 : vector<4x8x8xf32> to vector<4x8x8xbf16>
    %33 = vector.extract_strided_slice %22 {offsets = [0, 0], sizes = [32, 8], strides = [1, 1]} : vector<32x32xf32> to vector<32x8xf32>
    %34 = vector.shape_cast %33 : vector<32x8xf32> to vector<4x8x8xf32>
    %35 = arith.truncf %34 : vector<4x8x8xf32> to vector<4x8x8xbf16>
    %36 = vector.extract_strided_slice %23 {offsets = [0, 0], sizes = [32, 32], strides = [1, 1]} : vector<32x128xf32> to vector<32x32xf32>
    %37 = vector.shape_cast %36 : vector<32x32xf32> to vector<4x8x32xf32>
    %38 = vector.shape_cast %24 : vector<8x32xf32> to vector<1x8x32xf32>
    %39 = vector.broadcast %38 : vector<1x8x32xf32> to vector<4x8x32xf32>
    %40 = arith.mulf %37, %39 : vector<4x8x32xf32>
    %41 = vector.shape_cast %25 : vector<8x32xf32> to vector<1x8x32xf32>
    %42 = vector.broadcast %41 : vector<1x8x32xf32> to vector<4x8x32xf32>
    %43 = arith.mulf %37, %42 : vector<4x8x32xf32>
    %44 = tpu.concatenate %40, %43 in 2 : vector<4x8x32xf32>, vector<4x8x32xf32> -> vector<4x8x64xf32>
    %45 = vector.shape_cast %44 : vector<4x8x64xf32> to vector<32x64xf32>
    %46 = arith.truncf %45 : vector<32x64xf32> to vector<32x64xbf16>
    %cst_16 = arith.constant dense<0.000000e+00> : vector<32x8xf32>
    %47 = tpu.matmul %46, %26, %cst_16 {dimension_numbers = #tpu.dot_dimension_numbers<[1], [0], [0], [1], [0, 0, 1, 1], [], []>} : vector<32x64xbf16>, vector<64x8xbf16>, vector<32x8xf32> -> vector<32x8xf32>
    %48 = vector.shape_cast %47 : vector<32x8xf32> to vector<4x8x8xf32>
    "tpu.trace_start"() <{level = 10 : i32, message = "bnd,bmd->bnm"}> : () -> ()
    %cst_17 = arith.constant dense<0.000000e+00> : vector<4x8x8xf32>
    %49 = tpu.matmul %29, %32, %cst_17 {dimension_numbers = #tpu.dot_dimension_numbers<[2], [2], [1], [1], [0, 0, 0, 1, 1, 1], [0], [0]>} : vector<4x8x8xbf16>, vector<4x8x8xbf16>, vector<4x8x8xf32> -> vector<4x8x8xf32>
    "tpu.trace_stop"() : () -> ()
    %50 = arith.addf %49, %48 : vector<4x8x8xf32>
    %cst_18 = arith.constant dense<0xFF800000> : vector<4x8xf32>
    %51 = vector.multi_reduction <maximumf>, %50, %cst_18 [2] : vector<4x8x8xf32> to vector<4x8xf32>
    %52 = vector.shape_cast %51 : vector<4x8xf32> to vector<4x8x1xf32>
    %53 = vector.broadcast %52 : vector<4x8x1xf32> to vector<4x8x8xf32>
    %54 = arith.subf %50, %53 : vector<4x8x8xf32>
    %55 = math.exp %54 : vector<4x8x8xf32>
    %cst_19 = arith.constant dense<0.000000e+00> : vector<4x8xf32>
    %56 = vector.multi_reduction <add>, %55, %cst_19 [2] : vector<4x8x8xf32> to vector<4x8xf32>
    %57 = vector.shape_cast %56 : vector<4x8xf32> to vector<4x8x1xf32>
    %58 = tpu.reciprocal %57 {approx = true} : vector<4x8x1xf32> -> vector<4x8x1xf32>
    %59 = vector.broadcast %58 : vector<4x8x1xf32> to vector<4x8x8xf32>
    %60 = arith.mulf %55, %59 : vector<4x8x8xf32>
    %61 = arith.truncf %60 : vector<4x8x8xf32> to vector<4x8x8xbf16>
    "tpu.trace_start"() <{level = 10 : i32, message = "bnm,bmd->bnd"}> : () -> ()
    %cst_20 = arith.constant dense<0.000000e+00> : vector<4x8x8xf32>
    %62 = tpu.matmul %61, %35, %cst_20 {dimension_numbers = #tpu.dot_dimension_numbers<[2], [1], [1], [2], [0, 0, 0, 1, 1, 2], [0], [0]>} : vector<4x8x8xbf16>, vector<4x8x8xbf16>, vector<4x8x8xf32> -> vector<4x8x8xf32>
    "tpu.trace_stop"() : () -> ()
    %63 = vector.shape_cast %62 : vector<4x8x8xf32> to vector<32x8xf32>
    %64 = vector.extract_strided_slice %20 {offsets = [0, 8], sizes = [32, 8], strides = [1, 1]} : vector<32x32xf32> to vector<32x8xf32>
    %65 = vector.shape_cast %64 : vector<32x8xf32> to vector<4x8x8xf32>
    %66 = arith.truncf %65 : vector<4x8x8xf32> to vector<4x8x8xbf16>
    %67 = vector.extract_strided_slice %21 {offsets = [0, 8], sizes = [32, 8], strides = [1, 1]} : vector<32x32xf32> to vector<32x8xf32>
    %68 = vector.shape_cast %67 : vector<32x8xf32> to vector<4x8x8xf32>
    %69 = arith.truncf %68 : vector<4x8x8xf32> to vector<4x8x8xbf16>
    %70 = vector.extract_strided_slice %22 {offsets = [0, 8], sizes = [32, 8], strides = [1, 1]} : vector<32x32xf32> to vector<32x8xf32>
    %71 = vector.shape_cast %70 : vector<32x8xf32> to vector<4x8x8xf32>
    %72 = arith.truncf %71 : vector<4x8x8xf32> to vector<4x8x8xbf16>
    %73 = vector.extract_strided_slice %23 {offsets = [0, 32], sizes = [32, 32], strides = [1, 1]} : vector<32x128xf32> to vector<32x32xf32>
    %74 = vector.shape_cast %73 : vector<32x32xf32> to vector<4x8x32xf32>
    %75 = vector.shape_cast %24 : vector<8x32xf32> to vector<1x8x32xf32>
    %76 = vector.broadcast %75 : vector<1x8x32xf32> to vector<4x8x32xf32>
    %77 = arith.mulf %74, %76 : vector<4x8x32xf32>
    %78 = vector.shape_cast %25 : vector<8x32xf32> to vector<1x8x32xf32>
    %79 = vector.broadcast %78 : vector<1x8x32xf32> to vector<4x8x32xf32>
    %80 = arith.mulf %74, %79 : vector<4x8x32xf32>
    %81 = tpu.concatenate %77, %80 in 2 : vector<4x8x32xf32>, vector<4x8x32xf32> -> vector<4x8x64xf32>
    %82 = vector.shape_cast %81 : vector<4x8x64xf32> to vector<32x64xf32>
    %83 = arith.truncf %82 : vector<32x64xf32> to vector<32x64xbf16>
    %cst_21 = arith.constant dense<0.000000e+00> : vector<32x8xf32>
    %84 = tpu.matmul %83, %26, %cst_21 {dimension_numbers = #tpu.dot_dimension_numbers<[1], [0], [0], [1], [0, 0, 1, 1], [], []>} : vector<32x64xbf16>, vector<64x8xbf16>, vector<32x8xf32> -> vector<32x8xf32>
    %85 = vector.shape_cast %84 : vector<32x8xf32> to vector<4x8x8xf32>
    "tpu.trace_start"() <{level = 10 : i32, message = "bnd,bmd->bnm"}> : () -> ()
    %cst_22 = arith.constant dense<0.000000e+00> : vector<4x8x8xf32>
    %86 = tpu.matmul %66, %69, %cst_22 {dimension_numbers = #tpu.dot_dimension_numbers<[2], [2], [1], [1], [0, 0, 0, 1, 1, 1], [0], [0]>} : vector<4x8x8xbf16>, vector<4x8x8xbf16>, vector<4x8x8xf32> -> vector<4x8x8xf32>
    "tpu.trace_stop"() : () -> ()
    %87 = arith.addf %86, %85 : vector<4x8x8xf32>
    %cst_23 = arith.constant dense<0xFF800000> : vector<4x8xf32>
    %88 = vector.multi_reduction <maximumf>, %87, %cst_23 [2] : vector<4x8x8xf32> to vector<4x8xf32>
    %89 = vector.shape_cast %88 : vector<4x8xf32> to vector<4x8x1xf32>
    %90 = vector.broadcast %89 : vector<4x8x1xf32> to vector<4x8x8xf32>
    %91 = arith.subf %87, %90 : vector<4x8x8xf32>
    %92 = math.exp %91 : vector<4x8x8xf32>
    %cst_24 = arith.constant dense<0.000000e+00> : vector<4x8xf32>
    %93 = vector.multi_reduction <add>, %92, %cst_24 [2] : vector<4x8x8xf32> to vector<4x8xf32>
    %94 = vector.shape_cast %93 : vector<4x8xf32> to vector<4x8x1xf32>
    %95 = tpu.reciprocal %94 {approx = true} : vector<4x8x1xf32> -> vector<4x8x1xf32>
    %96 = vector.broadcast %95 : vector<4x8x1xf32> to vector<4x8x8xf32>
    %97 = arith.mulf %92, %96 : vector<4x8x8xf32>
    %98 = arith.truncf %97 : vector<4x8x8xf32> to vector<4x8x8xbf16>
    "tpu.trace_start"() <{level = 10 : i32, message = "bnm,bmd->bnd"}> : () -> ()
    %cst_25 = arith.constant dense<0.000000e+00> : vector<4x8x8xf32>
    %99 = tpu.matmul %98, %72, %cst_25 {dimension_numbers = #tpu.dot_dimension_numbers<[2], [1], [1], [2], [0, 0, 0, 1, 1, 2], [0], [0]>} : vector<4x8x8xbf16>, vector<4x8x8xbf16>, vector<4x8x8xf32> -> vector<4x8x8xf32>
    "tpu.trace_stop"() : () -> ()
    %100 = vector.shape_cast %99 : vector<4x8x8xf32> to vector<32x8xf32>
    %101 = vector.extract_strided_slice %20 {offsets = [0, 16], sizes = [32, 8], strides = [1, 1]} : vector<32x32xf32> to vector<32x8xf32>
    %102 = vector.shape_cast %101 : vector<32x8xf32> to vector<4x8x8xf32>
    %103 = arith.truncf %102 : vector<4x8x8xf32> to vector<4x8x8xbf16>
    %104 = vector.extract_strided_slice %21 {offsets = [0, 16], sizes = [32, 8], strides = [1, 1]} : vector<32x32xf32> to vector<32x8xf32>
    %105 = vector.shape_cast %104 : vector<32x8xf32> to vector<4x8x8xf32>
    %106 = arith.truncf %105 : vector<4x8x8xf32> to vector<4x8x8xbf16>
    %107 = vector.extract_strided_slice %22 {offsets = [0, 16], sizes = [32, 8], strides = [1, 1]} : vector<32x32xf32> to vector<32x8xf32>
    %108 = vector.shape_cast %107 : vector<32x8xf32> to vector<4x8x8xf32>
    %109 = arith.truncf %108 : vector<4x8x8xf32> to vector<4x8x8xbf16>
    %110 = vector.extract_strided_slice %23 {offsets = [0, 64], sizes = [32, 32], strides = [1, 1]} : vector<32x128xf32> to vector<32x32xf32>
    %111 = vector.shape_cast %110 : vector<32x32xf32> to vector<4x8x32xf32>
    %112 = vector.shape_cast %24 : vector<8x32xf32> to vector<1x8x32xf32>
    %113 = vector.broadcast %112 : vector<1x8x32xf32> to vector<4x8x32xf32>
    %114 = arith.mulf %111, %113 : vector<4x8x32xf32>
    %115 = vector.shape_cast %25 : vector<8x32xf32> to vector<1x8x32xf32>
    %116 = vector.broadcast %115 : vector<1x8x32xf32> to vector<4x8x32xf32>
    %117 = arith.mulf %111, %116 : vector<4x8x32xf32>
    %118 = tpu.concatenate %114, %117 in 2 : vector<4x8x32xf32>, vector<4x8x32xf32> -> vector<4x8x64xf32>
    %119 = vector.shape_cast %118 : vector<4x8x64xf32> to vector<32x64xf32>
    %120 = arith.truncf %119 : vector<32x64xf32> to vector<32x64xbf16>
    %cst_26 = arith.constant dense<0.000000e+00> : vector<32x8xf32>
    %121 = tpu.matmul %120, %26, %cst_26 {dimension_numbers = #tpu.dot_dimension_numbers<[1], [0], [0], [1], [0, 0, 1, 1], [], []>} : vector<32x64xbf16>, vector<64x8xbf16>, vector<32x8xf32> -> vector<32x8xf32>
    %122 = vector.shape_cast %121 : vector<32x8xf32> to vector<4x8x8xf32>
    "tpu.trace_start"() <{level = 10 : i32, message = "bnd,bmd->bnm"}> : () -> ()
    %cst_27 = arith.constant dense<0.000000e+00> : vector<4x8x8xf32>
    %123 = tpu.matmul %103, %106, %cst_27 {dimension_numbers = #tpu.dot_dimension_numbers<[2], [2], [1], [1], [0, 0, 0, 1, 1, 1], [0], [0]>} : vector<4x8x8xbf16>, vector<4x8x8xbf16>, vector<4x8x8xf32> -> vector<4x8x8xf32>
    "tpu.trace_stop"() : () -> ()
    %124 = arith.addf %123, %122 : vector<4x8x8xf32>
    %cst_28 = arith.constant dense<0xFF800000> : vector<4x8xf32>
    %125 = vector.multi_reduction <maximumf>, %124, %cst_28 [2] : vector<4x8x8xf32> to vector<4x8xf32>
    %126 = vector.shape_cast %125 : vector<4x8xf32> to vector<4x8x1xf32>
    %127 = vector.broadcast %126 : vector<4x8x1xf32> to vector<4x8x8xf32>
    %128 = arith.subf %124, %127 : vector<4x8x8xf32>
    %129 = math.exp %128 : vector<4x8x8xf32>
    %cst_29 = arith.constant dense<0.000000e+00> : vector<4x8xf32>
    %130 = vector.multi_reduction <add>, %129, %cst_29 [2] : vector<4x8x8xf32> to vector<4x8xf32>
    %131 = vector.shape_cast %130 : vector<4x8xf32> to vector<4x8x1xf32>
    %132 = tpu.reciprocal %131 {approx = true} : vector<4x8x1xf32> -> vector<4x8x1xf32>
    %133 = vector.broadcast %132 : vector<4x8x1xf32> to vector<4x8x8xf32>
    %134 = arith.mulf %129, %133 : vector<4x8x8xf32>
    %135 = arith.truncf %134 : vector<4x8x8xf32> to vector<4x8x8xbf16>
    "tpu.trace_start"() <{level = 10 : i32, message = "bnm,bmd->bnd"}> : () -> ()
    %cst_30 = arith.constant dense<0.000000e+00> : vector<4x8x8xf32>
    %136 = tpu.matmul %135, %109, %cst_30 {dimension_numbers = #tpu.dot_dimension_numbers<[2], [1], [1], [2], [0, 0, 0, 1, 1, 2], [0], [0]>} : vector<4x8x8xbf16>, vector<4x8x8xbf16>, vector<4x8x8xf32> -> vector<4x8x8xf32>
    "tpu.trace_stop"() : () -> ()
    %137 = vector.shape_cast %136 : vector<4x8x8xf32> to vector<32x8xf32>
    %138 = vector.extract_strided_slice %20 {offsets = [0, 24], sizes = [32, 8], strides = [1, 1]} : vector<32x32xf32> to vector<32x8xf32>
    %139 = vector.shape_cast %138 : vector<32x8xf32> to vector<4x8x8xf32>
    %140 = arith.truncf %139 : vector<4x8x8xf32> to vector<4x8x8xbf16>
    %141 = vector.extract_strided_slice %21 {offsets = [0, 24], sizes = [32, 8], strides = [1, 1]} : vector<32x32xf32> to vector<32x8xf32>
    %142 = vector.shape_cast %141 : vector<32x8xf32> to vector<4x8x8xf32>
    %143 = arith.truncf %142 : vector<4x8x8xf32> to vector<4x8x8xbf16>
    %144 = vector.extract_strided_slice %22 {offsets = [0, 24], sizes = [32, 8], strides = [1, 1]} : vector<32x32xf32> to vector<32x8xf32>
    %145 = vector.shape_cast %144 : vector<32x8xf32> to vector<4x8x8xf32>
    %146 = arith.truncf %145 : vector<4x8x8xf32> to vector<4x8x8xbf16>
    %147 = vector.extract_strided_slice %23 {offsets = [0, 96], sizes = [32, 32], strides = [1, 1]} : vector<32x128xf32> to vector<32x32xf32>
    %148 = vector.shape_cast %147 : vector<32x32xf32> to vector<4x8x32xf32>
    %149 = vector.shape_cast %24 : vector<8x32xf32> to vector<1x8x32xf32>
    %150 = vector.broadcast %149 : vector<1x8x32xf32> to vector<4x8x32xf32>
    %151 = arith.mulf %148, %150 : vector<4x8x32xf32>
    %152 = vector.shape_cast %25 : vector<8x32xf32> to vector<1x8x32xf32>
    %153 = vector.broadcast %152 : vector<1x8x32xf32> to vector<4x8x32xf32>
    %154 = arith.mulf %148, %153 : vector<4x8x32xf32>
    %155 = tpu.concatenate %151, %154 in 2 : vector<4x8x32xf32>, vector<4x8x32xf32> -> vector<4x8x64xf32>
    %156 = vector.shape_cast %155 : vector<4x8x64xf32> to vector<32x64xf32>
    %157 = arith.truncf %156 : vector<32x64xf32> to vector<32x64xbf16>
    %cst_31 = arith.constant dense<0.000000e+00> : vector<32x8xf32>
    %158 = tpu.matmul %157, %26, %cst_31 {dimension_numbers = #tpu.dot_dimension_numbers<[1], [0], [0], [1], [0, 0, 1, 1], [], []>} : vector<32x64xbf16>, vector<64x8xbf16>, vector<32x8xf32> -> vector<32x8xf32>
    %159 = vector.shape_cast %158 : vector<32x8xf32> to vector<4x8x8xf32>
    "tpu.trace_start"() <{level = 10 : i32, message = "bnd,bmd->bnm"}> : () -> ()
    %cst_32 = arith.constant dense<0.000000e+00> : vector<4x8x8xf32>
    %160 = tpu.matmul %140, %143, %cst_32 {dimension_numbers = #tpu.dot_dimension_numbers<[2], [2], [1], [1], [0, 0, 0, 1, 1, 1], [0], [0]>} : vector<4x8x8xbf16>, vector<4x8x8xbf16>, vector<4x8x8xf32> -> vector<4x8x8xf32>
    "tpu.trace_stop"() : () -> ()
    %161 = arith.addf %160, %159 : vector<4x8x8xf32>
    %cst_33 = arith.constant dense<0xFF800000> : vector<4x8xf32>
    %162 = vector.multi_reduction <maximumf>, %161, %cst_33 [2] : vector<4x8x8xf32> to vector<4x8xf32>
    %163 = vector.shape_cast %162 : vector<4x8xf32> to vector<4x8x1xf32>
    %164 = vector.broadcast %163 : vector<4x8x1xf32> to vector<4x8x8xf32>
    %165 = arith.subf %161, %164 : vector<4x8x8xf32>
    %166 = math.exp %165 : vector<4x8x8xf32>
    %cst_34 = arith.constant dense<0.000000e+00> : vector<4x8xf32>
    %167 = vector.multi_reduction <add>, %166, %cst_34 [2] : vector<4x8x8xf32> to vector<4x8xf32>
    %168 = vector.shape_cast %167 : vector<4x8xf32> to vector<4x8x1xf32>
    %169 = tpu.reciprocal %168 {approx = true} : vector<4x8x1xf32> -> vector<4x8x1xf32>
    %170 = vector.broadcast %169 : vector<4x8x1xf32> to vector<4x8x8xf32>
    %171 = arith.mulf %166, %170 : vector<4x8x8xf32>
    %172 = arith.truncf %171 : vector<4x8x8xf32> to vector<4x8x8xbf16>
    "tpu.trace_start"() <{level = 10 : i32, message = "bnm,bmd->bnd"}> : () -> ()
    %cst_35 = arith.constant dense<0.000000e+00> : vector<4x8x8xf32>
    %173 = tpu.matmul %172, %146, %cst_35 {dimension_numbers = #tpu.dot_dimension_numbers<[2], [1], [1], [2], [0, 0, 0, 1, 1, 2], [0], [0]>} : vector<4x8x8xbf16>, vector<4x8x8xbf16>, vector<4x8x8xf32> -> vector<4x8x8xf32>
    "tpu.trace_stop"() : () -> ()
    %174 = vector.shape_cast %173 : vector<4x8x8xf32> to vector<32x8xf32>
    %175 = tpu.concatenate %63, %100, %137, %174 in 1 : vector<32x8xf32>, vector<32x8xf32>, vector<32x8xf32>, vector<32x8xf32> -> vector<32x32xf32>
    %176 = arith.truncf %175 : vector<32x32xf32> to vector<32x32xbf16>
    %c0_36 = arith.constant 0 : index
    %c0_37 = arith.constant 0 : index
    %177 = vector.load %arg4[%c0_36, %c0_37] : memref<32x32xbf16, #tpu.memory_space<vmem>>, vector<32x32xbf16>
    %cst_38 = arith.constant dense<0.000000e+00> : vector<32x32xf32>
    %178 = tpu.matmul %176, %177, %cst_38 {dimension_numbers = #tpu.dot_dimension_numbers<[1], [0], [0], [1], [0, 0, 1, 1], [], []>} : vector<32x32xbf16>, vector<32x32xbf16>, vector<32x32xf32> -> vector<32x32xf32>
    %179 = arith.addf %1, %178 : vector<32x32xf32>
    %c0_39 = arith.constant 0 : index
    %c0_40 = arith.constant 0 : index
    %180 = vector.load %arg8[%c0_39, %c0_40] : memref<1x32xf32, #tpu.memory_space<vmem>>, vector<1x32xf32>
    %181 = arith.mulf %179, %179 : vector<32x32xf32>
    %cst_41 = arith.constant dense<0.000000e+00> : vector<32xf32>
    %182 = vector.multi_reduction <add>, %181, %cst_41 [1] : vector<32x32xf32> to vector<32xf32>
    %183 = vector.shape_cast %182 : vector<32xf32> to vector<32x1xf32>
    %184 = math.sqrt %183 : vector<32x1xf32>
    %cst_42 = arith.constant 0.176776692 : f32
    %185 = vector.broadcast %cst_42 : f32 to vector<32x1xf32>
    %186 = arith.mulf %184, %185 : vector<32x1xf32>
    %cst_43 = arith.constant 9.99999993E-9 : f32
    %187 = vector.broadcast %cst_43 : f32 to vector<32x1xf32>
    %188 = arith.addf %186, %187 : vector<32x1xf32>
    %cst_44 = arith.constant 1.000000e+00 : f32
    %189 = vector.broadcast %cst_44 : f32 to vector<32x1xf32>
    %190 = arith.divf %189, %188 : vector<32x1xf32>
    %191 = vector.broadcast %190 : vector<32x1xf32> to vector<32x32xf32>
    %192 = arith.mulf %179, %191 : vector<32x32xf32>
    %193 = vector.broadcast %180 : vector<1x32xf32> to vector<32x32xf32>
    %194 = arith.mulf %192, %193 : vector<32x32xf32>
    %195 = arith.truncf %194 : vector<32x32xf32> to vector<32x32xbf16>
    %c0_45 = arith.constant 0 : index
    %c0_46 = arith.constant 0 : index
    %196 = vector.load %arg9[%c0_45, %c0_46] : memref<32x64xbf16, #tpu.memory_space<vmem>>, vector<32x64xbf16>
    %cst_47 = arith.constant dense<0.000000e+00> : vector<32x64xf32>
    %197 = tpu.matmul %195, %196, %cst_47 {dimension_numbers = #tpu.dot_dimension_numbers<[1], [0], [0], [1], [0, 0, 1, 1], [], []>} : vector<32x32xbf16>, vector<32x64xbf16>, vector<32x64xf32> -> vector<32x64xf32>
    %c0_48 = arith.constant 0 : index
    %c0_49 = arith.constant 0 : index
    %198 = vector.load %arg10[%c0_48, %c0_49] : memref<1x64xf32, #tpu.memory_space<vmem>>, vector<1x64xf32>
    %199 = vector.broadcast %198 : vector<1x64xf32> to vector<32x64xf32>
    %200 = arith.addf %197, %199 : vector<32x64xf32>
    %cst_50 = arith.constant 5.000000e-01 : f32
    %201 = vector.broadcast %cst_50 : f32 to vector<32x64xf32>
    %202 = arith.mulf %201, %200 : vector<32x64xf32>
    %cst_51 = arith.constant 4.471500e-02 : f32
    %203 = vector.broadcast %cst_51 : f32 to vector<32x64xf32>
    %204 = arith.mulf %203, %200 : vector<32x64xf32>
    %205 = arith.mulf %204, %200 : vector<32x64xf32>
    %206 = arith.mulf %205, %200 : vector<32x64xf32>
    %207 = arith.addf %200, %206 : vector<32x64xf32>
    %cst_52 = arith.constant 0.797884583 : f32
    %208 = vector.broadcast %cst_52 : f32 to vector<32x64xf32>
    %209 = arith.mulf %208, %207 : vector<32x64xf32>
    %210 = math.tanh %209 : vector<32x64xf32>
    %cst_53 = arith.constant 1.000000e+00 : f32
    %211 = vector.broadcast %cst_53 : f32 to vector<32x64xf32>
    %212 = arith.addf %211, %210 : vector<32x64xf32>
    %213 = arith.mulf %202, %212 : vector<32x64xf32>
    %214 = arith.truncf %213 : vector<32x64xf32> to vector<32x64xbf16>
    %c0_54 = arith.constant 0 : index
    %c0_55 = arith.constant 0 : index
    %215 = vector.load %arg11[%c0_54, %c0_55] : memref<64x32xbf16, #tpu.memory_space<vmem>>, vector<64x32xbf16>
    %cst_56 = arith.constant dense<0.000000e+00> : vector<32x32xf32>
    %216 = tpu.matmul %214, %215, %cst_56 {dimension_numbers = #tpu.dot_dimension_numbers<[1], [0], [0], [1], [0, 0, 1, 1], [], []>} : vector<32x64xbf16>, vector<64x32xbf16>, vector<32x32xf32> -> vector<32x32xf32>
    %217 = arith.addf %179, %216 : vector<32x32xf32>
    %c0_57 = arith.constant 0 : index
    %c0_58 = arith.constant 0 : index
    %218 = vector.load %arg12[%c0_57, %c0_58] : memref<1x32xf32, #tpu.memory_space<vmem>>, vector<1x32xf32>
    %219 = vector.broadcast %218 : vector<1x32xf32> to vector<32x32xf32>
    %220 = arith.addf %217, %219 : vector<32x32xf32>
    %221 = vector.shape_cast %220 : vector<32x32xf32> to vector<4x8x32xf32>
    %c0_59 = arith.constant 0 : index
    %c0_60 = arith.constant 0 : index
    %c0_61 = arith.constant 0 : index
    %222 = vector.load %arg13[%c0_59, %c0_60, %c0_61] : memref<4x8x32xf32, #tpu.memory_space<vmem>>, vector<4x8x32xf32>
    tpu.vector_store %arg13[%c0_59, %c0_60, %c0_61], %221 {strides = array<i32>} : memref<4x8x32xf32, #tpu.memory_space<vmem>>, vector<4x8x32xf32>,
    return
  }
  func.func @transform_0(%arg0: i32) -> (i32, i32, i32) {
    %c0_i32 = arith.constant 0 : i32
    %c0_i32_0 = arith.constant 0 : i32
    %c0_i32_1 = arith.constant 0 : i32
    return %arg0, %c0_i32, %c0_i32_0 : i32, i32, i32
  }
  func.func @transform_1(%arg0: i32) -> (i32, i32) {
    %c0_i32 = arith.constant 0 : i32
    %c0_i32_0 = arith.constant 0 : i32
    %c0_i32_1 = arith.constant 0 : i32
    return %c0_i32, %c0_i32_0 : i32, i32
  }
  func.func @transform_2(%arg0: i32) -> (i32, i32) {
    %c0_i32 = arith.constant 0 : i32
    %c0_i32_0 = arith.constant 0 : i32
    %c0_i32_1 = arith.constant 0 : i32
    return %c0_i32, %c0_i32_0 : i32, i32
  }
  func.func @transform_3(%arg0: i32) -> (i32, i32) {
    %c0_i32 = arith.constant 0 : i32
    %c0_i32_0 = arith.constant 0 : i32
    %c0_i32_1 = arith.constant 0 : i32
    return %c0_i32, %c0_i32_0 : i32, i32
  }
  func.func @transform_4(%arg0: i32) -> (i32, i32) {
    %c0_i32 = arith.constant 0 : i32
    %c0_i32_0 = arith.constant 0 : i32
    %c0_i32_1 = arith.constant 0 : i32
    return %c0_i32, %c0_i32_0 : i32, i32
  }
  func.func @transform_5(%arg0: i32) -> (i32, i32) {
    %c0_i32 = arith.constant 0 : i32
    %c0_i32_0 = arith.constant 0 : i32
    %c0_i32_1 = arith.constant 0 : i32
    return %c0_i32, %c0_i32_0 : i32, i32
  }
  func.func @transform_6(%arg0: i32) -> (i32, i32) {
    %c0_i32 = arith.constant 0 : i32
    %c0_i32_0 = arith.constant 0 : i32
    %c0_i32_1 = arith.constant 0 : i32
    return %c0_i32, %c0_i32_0 : i32, i32
  }
  func.func @transform_7(%arg0: i32) -> (i32, i32) {
    %c0_i32 = arith.constant 0 : i32
    %c0_i32_0 = arith.constant 0 : i32
    %c0_i32_1 = arith.constant 0 : i32
    return %c0_i32, %c0_i32_0 : i32, i32
  }
  func.func @transform_8(%arg0: i32) -> (i32, i32) {
    %c0_i32 = arith.constant 0 : i32
    %c0_i32_0 = arith.constant 0 : i32
    %c0_i32_1 = arith.constant 0 : i32
    return %c0_i32, %c0_i32_0 : i32, i32
  }
  func.func @transform_9(%arg0: i32) -> (i32, i32) {
    %c0_i32 = arith.constant 0 : i32
    %c0_i32_0 = arith.constant 0 : i32
    %c0_i32_1 = arith.constant 0 : i32
    return %c0_i32, %c0_i32_0 : i32, i32
  }
  func.func @transform_10(%arg0: i32) -> (i32, i32) {
    %c0_i32 = arith.constant 0 : i32
    %c0_i32_0 = arith.constant 0 : i32
    %c0_i32_1 = arith.constant 0 : i32
    return %c0_i32, %c0_i32_0 : i32, i32
  }
  func.func @transform_11(%arg0: i32) -> (i32, i32) {
    %c0_i32 = arith.constant 0 : i32
    %c0_i32_0 = arith.constant 0 : i32
    %c0_i32_1 = arith.constant 0 : i32
    return %c0_i32, %c0_i32_0 : i32, i32
  }
  func.func @transform_12(%arg0: i32) -> (i32, i32, i32) {
    %c0_i32 = arith.constant 0 : i32
    %c0_i32_0 = arith.constant 0 : i32
    %c0_i32_1 = arith.constant 0 : i32
    return %arg0, %c0_i32, %c0_i32_0 : i32, i32, i32
  }
}

</mosaic_0001>

<bundles_post_ra>
// kernel: tpu_custom_call.1
= control target key start
LH: loop header
LB: loop body
LE: loop exit
PB: predicated region body
PF: predicated region fallthrough
CT: control target
= control target key end

     0   :  { %s3917_s0 = inlined_call_operand.vmem [shape: f32[8,8,32], index: 0, kind: input, shape index: {}]   ;;  %s3918_s1 = inlined_call_operand.vmem [shape: f32[1,32], index: 1, kind: input, shape index: {}]   ;;  %s3919_s2 = inlined_call_operand.hbm [shape: bf16[32,224], index: 2, kind: input, shape index: {}]   ;;  %s3920_s3 = inlined_call_operand.hbm [shape: bf16[32,32], index: 3, kind: input, shape index: {}]   ;;  %s3921_s4 = inlined_call_operand.hbm [shape: f32[8,32], index: 4, kind: input, shape index: {}]   ;;  %s3922_s5 = inlined_call_operand.hbm [shape: f32[8,32], index: 5, kind: input, shape index: {}]   ;;  %s3923_s6 = inlined_call_operand.vmem [shape: bf16[64,8], index: 6, kind: input, shape index: {}]   ;;  %s3924_s7 = inlined_call_operand.vmem [shape: f32[1,32], index: 7, kind: input, shape index: {}]   ;;  %s3925_s8 = inlined_call_operand.hbm [shape: bf16[32,64], index: 8, kind: input, shape index: {}]   ;;  %s3926_s9 = inlined_call_operand.vmem [shape: f32[1,64], index: 9, kind: input, shape index: {}]   ;;  %s3927_s10 = inlined_call_operand.vmem [shape: bf16[64,32], index: 10, kind: input, shape index: {}]   ;;  %s3928_s11 = inlined_call_operand.vmem [shape: f32[1,32], index: 11, kind: input, shape index: {}]   ;;  %s3929_s12 = inlined_call_operand.hbm [shape: f32[8,8,32], index: 12, kind: output, shape index: {}]  }
   0x1   :  { %3937 = sst [smem:[#allocation22_spill]] %s3919_s2 }
   0x2   :  { %3938 = sst [smem:[#allocation23_spill]] %s3920_s3 }
   0x3   :  { %3939 = sst [smem:[#allocation24_spill]] %s3922_s5 }
   0x4   :  { %3940 = sst [smem:[#allocation25_spill]] %s3929_s12 }
   0x5   :  { %17 = vsyncpa [#allocation3], 0 }
   0x6   :  { %18 = vsyncpa [#allocation6], 0 }
   0x7   :  { %19 = vsyncpa [#allocation9], 0 }
   0x8   :  { %20 = vsyncpa [#allocation4], 0 }
   0x9   :  { %22 = vsyncpa [#allocation4 + $0x1], 0  ;;  %s3249_s21 = smov 0   ;;  %s3251_s22 = smov 0  }
   0xa   :  { %s3253_s23 = smov 0   ;;  %s3255_s24 = smov 0  }
   0xb LB: > { %3941 = sst [smem:[#allocation16_spill]] %s3145_s21  ;;  %s3270_s25 = sadd.s32 4294967295, %s3157_s24   ;;  %s3157_s24 = sphi %s3255_s24, %s3966_s24   ;;  %s3153_s23 = sphi %s3253_s23, %s3968_s23   ;;  %s3149_s22 = sphi %s3251_s22, %s3970_s22   ;;  %s3145_s21 = sphi %s3249_s21, %s3969_s21  }
   0xc   : > { %3942 = sst [smem:[#allocation17_spill]] %s3153_s23  ;;  %s2466_s26 = sadd.s32 4294967294, %s3157_s24  }
   0xd   : > { %3943 = sst [smem:[#allocation18_spill]] %s3157_s24  ;;  %s3274_s27 = sadd.s32 1, %s3157_s24  }
   0xe   : > { %3944 = sst [smem:[#allocation19_spill]] %s3274_s27  ;;  %s292_s28 = sadd.s32 1, %s3153_s23 }
   0xf   : > { %s289_s29 = ssub.s32 %s3157_s24, %s3274_s27  ;;  %p302_p0 = scmp.ne.s32.totalorder %s3153_s23, %s3149_s22 }
  0x10   : > { %p290_p1 = scmp.eq.s32.totalorder %s289_s29, 0  ;;  %p303_p2 = scmp.eq.s32.totalorder %s3270_s25, 1 }
  0x11   : > { %p308_p3 = scmp.ne.s32.totalorder %s3149_s22, %s3145_s21  ;;  %p309_p4 = scmp.eq.s32.totalorder %s2466_s26, 1 }
  0x12   : > { %s3285_s30 = scalar_select %p290_p1, %s3153_s23, %s292_s28  }
  0x13   : > { %p3287_p5 = por %p303_p2, %p302_p0  ;;  %p3291_p6 = por %p309_p4, %p308_p3 }
  0x14   : > { %3945 = sst [smem:[#allocation20_spill]] %s3285_s30  ;;  %p2467_p7 = scmp.ge.s32.totalorder %s3157_s24, 1 }
  0x15   : > { %s3947_s14 = scalar_select %p3291_p6, 1, 0 }
  0x16   : > { %p316_p8 = scmp.lt.s32.totalorder %s3157_s24, 3  ;;  %p2663_p9 = scmp.eq.s32.totalorder %s3270_s25, 0 }
  0x17   : > { %3948 = sst [smem:[#allocation21_spill]] %s3947_s14  ;;  %s3159_s19 = smov [#allocation5]  }
  0x18   : > { %p3298_p10 = pnand %p2467_p7, %p316_p8  ;;  %s3950_s3 = sld [smem:[#allocation23_spill]] }
  0x19   : > { %s346_s20 = sshll.u32 %s3159_s19, 4  ;;  %s3952_s5 = sld [smem:[#allocation24_spill]]  ;;  %s347_s20 = int_to_ptr.vmem [resolvable:$true] %s346_s20 }
  0x1a   : > { %p2643_p11 = pneg %p3298_p10  ;;  %s3160_s16 = smov 64  }
  0x1b   : > { %s3161_s17 = smov 4   ;;  %s3953_s2 = sld [smem:[#allocation22_spill]] }
  0x1c   : > { %p3309_p12 = pnand %p2663_p9, %p2643_p11  ;;  %s3163_s28 = smov [#allocation2]  }
  0x1d   : > { %s332_s29 = sshll.u32 %s3163_s28, 4  ;;  %s359_s24 = sshll.u32 %s3921_s4, 4  ;;  %s333_s29 = int_to_ptr.vmem [resolvable:$true] %s332_s29  ;;  %s360_s24 = int_to_ptr.hbm [resolvable:$true] %s359_s24 }
  0x1e   : > { %s344_s18 = sshll.u32 %s3950_s3, 4  ;;  %s3162_s3 = smov [#allocation8]   ;;  %s345_s18 = int_to_ptr.hbm [resolvable:$true] %s344_s18 }
  0x1f   : > { %s371_s30 = sshll.u32 %s3952_s5, 4  ;;  %s373_s19 = sshll.u32 %s3162_s3, 4  ;;  %s372_s30 = int_to_ptr.hbm [resolvable:$true] %s371_s30  ;;  %s374_s19 = int_to_ptr.vmem [resolvable:$true] %s373_s19 }
  0x20   : > { %2649 = dma.hbm_to_vmem [thread:$0]  (!%p3309_p12), %s345_s18, 256, %s347_s20, [#allocation6], %s3160_s16, %s3160_s16, %s3161_s17  }
  0x21   : > { %s330_s14 = sshll.u32 %s3953_s2, 4  ;;  %s3164_s18 = smov 128   ;;  %s331_s14 = int_to_ptr.hbm [resolvable:$true] %s330_s14 }
  0x22   : > { %2655 = dma.hbm_to_vmem [thread:$0]  (!%p3309_p12), %s372_s30, 128, %s374_s19, [#allocation9]  }
  0x23   : > { %s3165_s20 = smov 8   ;;  %s3166_s3 = smov [#allocation7]  }
  0x24   : > { %2646 = dma.hbm_to_vmem [thread:$0]  (!%p3309_p12), %s331_s14, 512, %s333_s29, [#allocation3], %s3164_s18, %s3164_s18, %s3165_s20  }
  0x25   : > { %s361_s23 = sshll.u32 %s3166_s3, 4  ;;  %s388_s12 = sshll.u32 %s3925_s8, 4  ;;  %s362_s23 = int_to_ptr.vmem [resolvable:$true] %s361_s23  ;;  %s389_s12 = int_to_ptr.hbm [resolvable:$true] %s388_s12 }
  0x26   : > { %2652 = dma.hbm_to_vmem [thread:$0]  (!%p3309_p12), %s360_s24, 128, %s362_s23, [#allocation6]  }
  0x27   : > { %s3167_s30 = smov [#allocation10]   ;;  %424 = sbr.rel (%p3298_p10) target bundleno = 3055 (0xbef), region = 68 }
  0x28   : > { %s390_s19 = sshll.u32 %s3167_s30, 4  ;;  %s391_s19 = int_to_ptr.vmem [resolvable:$true] %s390_s19 }
  0x29   : > { %2658 = dma.hbm_to_vmem [thread:$0]  (!%p3309_p12), %s389_s12, 256, %s391_s19, [#allocation9], %s3160_s16, %s3160_s16, %s3161_s17  }
  0x2c   : > { %3128 = dma.done.wait (%p2663_p9), [#allocation3], 512  }
  0x2d   : > { %3130 = vsyncadd (%p2663_p9), [#allocation3], 4294966784 }
  0x2e   : > { %3132 = dma.done.wait (%p2663_p9), [#allocation6], 384  }
  0x2f   : > { %3134 = vsyncadd (%p2663_p9), [#allocation6], 4294966912 }
  0x30   : > { %3136 = dma.done.wait (%p2663_p9), [#allocation9], 384  }
  0x31   : > { %3138 = vsyncadd (%p2663_p9), [#allocation9], 4294966912  ;;  %s2481_s2 = sshll.u32 %s3270_s25, 2  ;;  %vm504_vm0 = vcmask 261120   ;;  %v2493_v14 = vld [vmem:[#allocation2 + $0x10] sm:$0xf] }
  0x32   : > { %p488_p13 = scmp.lt.s32.totalorder %s2481_s2, 7  ;;  %v2605_v15 = vld [vmem:[#allocation2 + $0x14] sm:$0xf0]  ;;  %v2604_v16 = vld [vmem:[#allocation2 + $0x14] sm:$0xf]  ;;  %s3168_s14 = smov 96  }
  0x33   : > { %v2494_v17 = vor.u32 %v2605_v15, %v2493_v14  ;;  %v2495_v18 = vld [vmem:[#allocation2 + $0x18] sm:$0xf0]  ;;  %v2485_v19 = vld [vmem:[#allocation2] sm:$0xf]  ;;  %v2603_v20 = vld [vmem:[#allocation2 + $0x4] sm:$0xf0] }
  0x34   : > { %s3972_s2 = smov (!%p488_p13, %s2481_s2), 7  ;;  %v2498_v21 = vor.u32 %v2604_v16, %v2495_v18  ;;  %v2602_v22 = vld [vmem:[#allocation2 + $0x4] sm:$0xf]  ;;  %v2487_v23 = vld [vmem:[#allocation2 + $0x8] sm:$0xf0]  ;;  %v2486_v24 = vor.u32 %v2603_v20, %v2485_v19  ;;  %s3169_s16 = smov 64  }
  0x35   : > { %s2482_s5 = sshll.u32 %s3972_s2, 3  ;;  %682 = vmatpush.bf16.msra.mxu0 %v2494_v17  ;;  %2619 = vmatpush.bf16.msra.mxu2 %v2494_v17  ;;  %v2490_v26 = vor.u32 %v2602_v22, %v2487_v23  ;;  %s3170_s17 = smov 32  }
  0x36   : > { %s3353_s24 = scalar_lea.vmem %s3917_s0, %s2482_s5  ;;  %701 = vmatpush.bf16.msra.mxu1 %v2498_v21  ;;  %s3171_s19 = smov 120  }
  0x37   : > { %v3356_v0 = vld [vmem:[%s3353_s24 + $0x10] sm:$0xff]  ;;  %v3359_v1 = vld [vmem:[%s3353_s24] sm:$0xff]  ;;  %v3366_v4 = vld [vmem:[%s3353_s24 + $0x18] sm:$0xff]  ;;  %s3172_s2 = smov 88   ;;  %s3173_s5 = smov 56  }
  0x38   : > { %v502_v2 = vmul.f32 %v3356_v0, %v3356_v0  ;;  %v500_v3 = vmul.f32 %v3359_v1, %v3359_v1  ;;  %v3369_v5 = vld [vmem:[%s3353_s24 + $0x8] sm:$0xff]  ;;  %v503_v8 = vmul.f32 %v3366_v4, %v3366_v4  ;;  %s3174_s12 = smov 80   ;;  %s3175_s21 = smov 112  }
  0x39   : > { %v501_v9 = vmul.f32 %v3369_v5, %v3369_v5  ;;  %683 = vmatpush.bf16.msra.mxu0 %v2486_v24  ;;  %2620 = vmatpush.bf16.msra.mxu2 %v2486_v24  ;;  %s3176_s15 = smov 48   ;;  %s3177_s26 = smov 72  }
  0x3a   : > { %v511_v6 = vsel %vm504_vm0, %v502_v2, 0.0  ;;  %v505_v7 = vsel %vm504_vm0, %v500_v3, 0.0  ;;  %v514_v10 = vsel %vm504_vm0, %v503_v8, 0.0  ;;  %702 = vmatpush.bf16.msra.mxu1 %v2490_v26  ;;  %s3181_s28 = smov 16   ;;  %s3182_s29 = smov 24  }
  0x3b   : > { %512 = vadd.xlane.f32.xlu1 %v511_v6  ;;  %506 = vadd.xlane.f32.xlu0 %v505_v7  ;;  %v508_v11 = vsel %vm504_vm0, %v501_v9, 0.0  ;;  %s3962_s20 = sld [smem:[#allocation25_spill]] }
  0x43   : > { %515 = vadd.xlane.f32.xlu1 %v514_v10  ;;  %509 = vadd.xlane.f32.xlu0 %v508_v11 }
  0xae   : > { %v513_v12 = vpop.xlane.xlu1 %512  ;;  %v507_v13 = vpop.xlane.xlu0 %506 }
  0xaf   : > { %2825 = vrsqrt.f32 %v513_v12  ;;  %vm548_vm1 = vcmp.eq.f32.partialorder %v513_v12, inf  ;;  %v551_v42 = vand.u32 2147483648, %v513_v12  ;;  %vm550_vm2 = vcmp.eq.f32.partialorder %v513_v12, 0.0 }
  0xb0   : > { %2827 = vrsqrt.f32 %v507_v13  ;;  %vm524_vm3 = vcmp.eq.f32.partialorder %v507_v13, inf  ;;  %v527_v50 = vand.u32 2147483648, %v507_v13  ;;  %vm526_vm4 = vcmp.eq.f32.partialorder %v507_v13, 0.0 }
  0xb5   : > { %v2826_v25 = vpop.eup %2825 }
  0xb6   : > { %v2828_v27 = vpop.eup %2827  ;;  %v542_v28 = vmul.f32 %v2826_v25, %v513_v12  ;;  %v516_v29 = vpop.xlane.xlu1 %515 }
  0xb7   : > { %v510_v30 = vpop.xlane.xlu0 %509  ;;  %v518_v31 = vmul.f32 %v2828_v27, %v507_v13  ;;  %2829 = vrsqrt.f32 %v516_v29  ;;  %vm560_vm5 = vcmp.eq.f32.partialorder %v516_v29, inf  ;;  %v563_v63 = vand.u32 2147483648, %v516_v29 }
  0xb8   : > { %v543_v32 = vmul.f32 %v2826_v25, %v542_v28  ;;  %2831 = vrsqrt.f32 %v510_v30  ;;  %vm562_vm6 = vcmp.eq.f32.partialorder %v516_v29, 0.0  ;;  %vm536_vm7 = vcmp.eq.f32.partialorder %v510_v30, inf }
  0xb9   : > { %v519_v33 = vmul.f32 %v2828_v27, %v518_v31  ;;  %v539_v8 = vand.u32 2147483648, %v510_v30  ;;  %vm538_vm8 = vcmp.eq.f32.partialorder %v510_v30, 0.0 }
  0xba   : > { %v544_v34 = vmul.f32 0.5, %v543_v32 }
  0xbb   : > { %v520_v35 = vmul.f32 0.5, %v519_v33 }
  0xbc   : > { %v545_v36 = vsub.f32 1.5, %v544_v34 }
  0xbd   : > { %v2830_v37 = vpop.eup %2829  ;;  %v521_v38 = vsub.f32 1.5, %v520_v35 }
  0xbe   : > { %v2832_v39 = vpop.eup %2831  ;;  %v546_v40 = vmul.f32 %v2826_v25, %v545_v36  ;;  %v554_v41 = vmul.f32 %v2830_v37, %v516_v29 }
  0xbf   : > { %v522_v43 = vmul.f32 %v2828_v27, %v521_v38  ;;  %v530_v44 = vmul.f32 %v2832_v39, %v510_v30 }
  0xc0   : > { %v547_v45 = vmul.f32 %v546_v40, %v513_v12  ;;  %v555_v46 = vmul.f32 %v2830_v37, %v554_v41 }
  0xc1   : > { %v523_v47 = vmul.f32 %v522_v43, %v507_v13  ;;  %v531_v48 = vmul.f32 %v2832_v39, %v530_v44 }
  0xc2   : > { %v549_v49 = vsel %vm548_vm1, %v513_v12, %v547_v45  ;;  %v556_v51 = vmul.f32 0.5, %v555_v46 }
  0xc3   : > { %v552_v52 = vsel %vm550_vm2, %v551_v42, %v549_v49  ;;  %v525_v53 = vsel %vm524_vm3, %v507_v13, %v523_v47  ;;  %v532_v54 = vmul.f32 0.5, %v531_v48 }
  0xc4   : > { %v567_v55 = vmul.f32 0.17677669, %v552_v52  ;;  %v528_v56 = vsel %vm526_vm4, %v527_v50, %v525_v53  ;;  %v557_v57 = vsub.f32 1.5, %v556_v51 }
  0xc5   : > { %v565_v58 = vmul.f32 0.17677669, %v528_v56  ;;  %v533_v59 = vsub.f32 1.5, %v532_v54 }
  0xc6   : > { %v571_v60 = vadd.f32 1e-08, %v567_v55  ;;  %v558_v61 = vmul.f32 %v2830_v37, %v557_v57  ;;  %v3407_v57 = vld [vmem:[#allocation8] sm:$0xff] }
  0xc7   : > { %v569_v62 = vadd.f32 1e-08, %v565_v58  ;;  %v534_v2 = vmul.f32 %v2832_v39, %v533_v59  ;;  %v3389_v39 = vld [vmem:[#allocation7] sm:$0xff]  ;;  %v2821_v59 = vld [vmem:[%s3918_s1] ss:$0 sm:$0xff] }
  0xc8   : > { %2833 = vrcp.f32 %v571_v60  ;;  %v559_v3 = vmul.f32 %v558_v61, %v516_v29  ;;  %vm608_vm9 = vweird.f32 %v571_v60  ;;  %v614_v22 = vand.u32 2147483648, %v571_v60  ;;  %729 = vrot.lane.b32.xlu2 %v3389_v39, %s3168_s14 }
  0xc9   : > { %2835 = vrcp.f32 %v569_v62  ;;  %v535_v6 = vmul.f32 %v534_v2, %v510_v30  ;;  %v612_v23 = vand.u32 2147483647, %v571_v60  ;;  %v582_v32 = vand.u32 2147483647, %v569_v62 }
  0xca   : > { %v561_v7 = vsel %vm560_vm5, %v516_v29, %v559_v3  ;;  %v584_v33 = vand.u32 2147483648, %v569_v62  ;;  %vm578_vm14 = vweird.f32 %v569_v62 }
  0xcb   : > { %v564_v9 = vsel %vm562_vm6, %v563_v63, %v561_v7  ;;  %v537_v10 = vsel %vm536_vm7, %v510_v30, %v535_v6  ;;  %v615_v30 = vor.u32 1.1754944e-38, %v614_v22  ;;  %vm3383_vm13 = vcmp.eq.f32.partialorder %v612_v23, 8.507059e+37 }
  0xcc   : > { %v568_v11 = vmul.f32 0.17677669, %v564_v9  ;;  %v540_v12 = vsel %vm538_vm8, %v539_v8, %v537_v10  ;;  %vm583_vm3 = vcmp.eq.f32.partialorder %v582_v32, 8.507059e+37  ;;  %v585_v46 = vor.u32 1.1754944e-38, %v584_v33 }
  0xcd   : > { %v566_v13 = vmul.f32 0.17677669, %v540_v12 }
  0xce   : > { %v2834_v14 = vpop.eup %2833  ;;  %v572_v15 = vadd.f32 1e-08, %v568_v11 }
  0xcf   : > { %v2836_v16 = vpop.eup %2835  ;;  %v570_v17 = vadd.f32 1e-08, %v566_v13  ;;  %v604_v18 = vmul.f32 %v2834_v14, %v571_v60  ;;  %vm609_vm10 = vweird.f32 %v2834_v14 }
  0xd0   : > { %2837 = vrcp.f32 %v572_v15  ;;  %v574_v19 = vmul.f32 %v2836_v16, %v569_v62  ;;  %vm3379_vm11 = vmor %vm608_vm9, %vm609_vm10  ;;  %vm579_vm12 = vweird.f32 %v2836_v16  ;;  %v629_v38 = vand.u32 2147483648, %v572_v15  ;;  %737 = vrot.lane.b32.xlu2 %v3407_v57, %s3168_s14 }
  0xd1   : > { %2839 = vrcp.f32 %v570_v17  ;;  %v605_v21 = vsub.f32 1.0, %v604_v18  ;;  %vm3391_vm15 = vmor %vm578_vm14, %vm579_vm12  ;;  %vm623_vm1 = vweird.f32 %v572_v15  ;;  %v627_v42 = vand.u32 2147483647, %v572_v15 }
  0xd2   : > { %v575_v20 = vsub.f32 1.0, %v574_v19  ;;  %v599_v47 = vand.u32 2147483648, %v570_v17  ;;  %v597_v50 = vand.u32 2147483647, %v570_v17  ;;  %v630_v52 = vor.u32 1.1754944e-38, %v629_v38 }
  0xd3   : > { %v606_v25 = vmul.f32 %v2834_v14, %v605_v21  ;;  %vm628_vm6 = vcmp.eq.f32.partialorder %v627_v42, 8.507059e+37  ;;  %vm593_vm7 = vweird.f32 %v570_v17  ;;  %vm837_vm10 = vcmask 64512  }
  0xd4   : > { %v576_v24 = vmul.f32 %v2836_v16, %v575_v20  ;;  %v600_v58 = vor.u32 1.1754944e-38, %v599_v47  ;;  %vm598_vm9 = vcmp.eq.f32.partialorder %v597_v50, 8.507059e+37  ;;  %v3476_v47 = vld [vmem:[%s3923_s6 + $0x8] sm:$0xff]  ;;  %vm982_vm12 = vcmask 1043456  }
  0xd5   : > { %v607_v29 = vadd.f32 %v2834_v14, %v606_v25  ;;  %vm1984_vm14 = vcmask 195584  }
  0xd6   : > { %v2838_v27 = vpop.eup %2837  ;;  %v577_v28 = vadd.f32 %v2836_v16, %v576_v24 }
  0xd7   : > { %v2840_v31 = vpop.eup %2839  ;;  %v619_v35 = vmul.f32 %v2838_v27, %v572_v15  ;;  %v611_v37 = vsel %vm3379_vm11, %v2834_v14, %v607_v29  ;;  %vm624_vm2 = vweird.f32 %v2838_v27  ;;  %vm806_vm11 = vcmask 523264  }
  0xd8   : > { %v589_v36 = vmul.f32 %v2840_v31, %v570_v17  ;;  %v581_v43 = vsel %vm3391_vm15, %v2836_v16, %v577_v28  ;;  %v616_v45 = vsel %vm3383_vm13, %v615_v30, %v611_v37  ;;  %vm594_vm4 = vweird.f32 %v2840_v31  ;;  %vm3402_vm5 = vmor %vm623_vm1, %vm624_vm2 }
  0xd9   : > { %v620_v41 = vsub.f32 1.0, %v619_v35  ;;  %v586_v53 = vsel %vm583_vm3, %v585_v46, %v581_v43  ;;  %v635_v55 = vmul.f32 %v616_v45, %v3356_v0  ;;  %vm595_vm8 = vmor %vm593_vm7, %vm594_vm4  ;;  %v3464_v45 = vld [vmem:[%s3923_s6 + $0x18] sm:$0xff]  ;;  %v3470_v46 = vld [vmem:[%s3923_s6 + $0x10] sm:$0xff]  ;;  %vm1979_vm13 = vcmask 130048  }
  0xda   : > { %v590_v44 = vsub.f32 1.0, %v589_v36  ;;  %v633_v62 = vmul.f32 %v586_v53, %v3359_v1  ;;  %817 = vmatpush.bf16.msrb.mxu2 %v3464_v45 }
  0xdb   : > { %v621_v48 = vmul.f32 %v2838_v27, %v620_v41  ;;  %v642_v3 = vmul.f32 %v2821_v59, %v635_v55 }
  0xdc   : > { %v591_v49 = vmul.f32 %v2840_v31, %v590_v44  ;;  %v640_v8 = vmul.f32 %v2821_v59, %v633_v62 }
  0xdd   : > { %v622_v54 = vadd.f32 %v2838_v27, %v621_v48  ;;  %v3482_v48 = vld [vmem:[%s3923_s6] sm:$0xff] }
  0xde   : > { %v592_v56 = vadd.f32 %v2840_v31, %v591_v49  ;;  %818 = vmatpush.bf16.msrb.mxu2 %v3470_v46 }
  0xdf   : > { %v626_v60 = vsel %vm3402_vm5, %v2838_v27, %v622_v54 }
  0xe0   : > { %v596_v61 = vsel %vm595_vm8, %v2840_v31, %v592_v56  ;;  %v631_v63 = vsel %vm628_vm6, %v630_v52, %v626_v60 }
  0xe1   : > { %v601_v2 = vsel %vm598_vm9, %v600_v58, %v596_v61  ;;  %v636_v0 = vmul.f32 %v631_v63, %v3366_v4 }
  0xe2   : > { %v634_v6 = vmul.f32 %v601_v2, %v3369_v5  ;;  %819 = vmatpush.bf16.msrb.mxu2 %v3476_v47 }
  0xe3   : > { %v643_v7 = vmul.f32 %v2821_v59, %v636_v0 }
  0xe4   : > { %v641_v9 = vmul.f32 %v2821_v59, %v634_v6 }
  0xe5   : > { %v645_v10 = vpack.c.bf16 %v643_v7, %v642_v3 }
  0xe6   : > { %v644_v11 = vpack.c.bf16 %v641_v9, %v640_v8  ;;  %820 = vmatpush.bf16.msrb.mxu2 %v3482_v48 }
  0xe7   : > { %2500 = vmatmul.msk.bf16.vlgmr.msra.gmra.mxu2 %vm504_vm0, %v645_v10 }
  0xe8   : > { %2499 = vmatmul.msk.bf16.vlgmr.msra.gmra.mxu0 %vm504_vm0, %v644_v11  ;;  %2501 = vmatmul.msk.bf16.vlgmr.msra.gmra.mxu1 %vm504_vm0, %v644_v11 }
  0xf8   : > { %2502 = vmatmul.msk.bf16.gmra.mxu1 %vm504_vm0, %v645_v10 }
 0x122   : > { %v730_v1 = vpop.permute.xlu2 %729 }
 0x12a   : > { %v738_v15 = vpop.permute.xlu2 %737 }
 0x165   : > { %v685_v4 = vpop.f32.mrf.mxu0  ;;  %v3447_v36 = vpop.f32.mrf.mxu1 }
 0x166   : > { %v3423_v12 = vpack.c.bf16 %v685_v4, %v685_v4  ;;  %v732_v17 = vmul.f32 %v730_v1, %v685_v4  ;;  %v740_v18 = vmul.f32 %v738_v15, %v685_v4  ;;  %v1066_v43 = vmul.f32 %v3407_v57, %v3447_v36 }
 0x168   : > { %v833_v13 = vunpack.c.l.b16 %v3423_v12 }
 0x16a   : > { %v3426_v5 = vpack.c.b16 %v833_v13, %v833_v13  ;;  %v690_v14 = vpop.f32.mrf.mxu2 }
 0x16b   : > { %v742_v24 = vmul.f32 %v738_v15, %v690_v14  ;;  %v726_v34 = vpack.c.bf16 %v690_v14, %v690_v14  ;;  %v734_v35 = vmul.f32 %v730_v1, %v690_v14 }
 0x16c   : > { %835 = vrot.lane.b32.xlu0 %v3426_v5, %s3168_s14 }
 0x16d   : > { %v687_v16 = vpop.f32.mrf.mxu0  ;;  %v882_v38 = vunpack.c.l.b16 %v726_v34  ;;  %v3452_v41 = vpop.f32.mrf.mxu1 }
 0x16e   : > { %v733_v19 = vmul.f32 %v730_v1, %v687_v16  ;;  %v741_v20 = vmul.f32 %v738_v15, %v687_v16  ;;  %v3430_v21 = vpack.c.bf16 %v687_v16, %v687_v16  ;;  %v1067_v42 = vmul.f32 %v3407_v57, %v3452_v41 }
 0x16f   : > { %v3450_v40 = vpack.c.b16 %v882_v38, %v882_v38 }
 0x170   : > { %v2736_v22 = vpack.i.bf16 %v741_v20, %v740_v18  ;;  %v2731_v23 = vpack.i.bf16 %v733_v19, %v732_v17  ;;  %v858_v28 = vunpack.c.l.b16 %v3430_v21  ;;  %v2751_v44 = vpack.i.bf16 %v1067_v42, %v1066_v43 }
 0x172   : > { %2737 = vrot.lane.b32.xlu2 %v2736_v22, %s3169_s16  ;;  %2732 = vrot.lane.b32.xlu1 %v2731_v23, %s3170_s17  ;;  %v692_v25 = vpop.f32.mrf.mxu2  ;;  %v3441_v32 = vpack.c.b16 %v858_v28, %v858_v28 }
 0x173   : > { %v3434_v26 = vpack.c.bf16 %v692_v25, %v692_v25  ;;  %v743_v27 = vmul.f32 %v738_v15, %v692_v25  ;;  %v735_v33 = vmul.f32 %v730_v1, %v692_v25 }
 0x175   : > { %v906_v29 = vunpack.c.l.b16 %v3434_v26  ;;  %v2746_v30 = vpack.i.bf16 %v743_v27, %v742_v24  ;;  %v2741_v37 = vpack.i.bf16 %v735_v33, %v734_v35  ;;  %v3502_v13 = vpop.f32.mrf.mxu1 }
 0x177   : > { %v3438_v31 = vpack.c.b16 %v906_v29, %v906_v29  ;;  %2747 = vrot.lane.b32.xlu0 %v2746_v30, %s3169_s16 }
 0x17a   : > { %908 = vrot.lane.b32.xlu1 %v3438_v31, %s3168_s14  ;;  %860 = vrot.lane.b32.xlu2 %v3441_v32, %s3168_s14 }
 0x17d   : > { %v3504_v16 = vpop.f32.mrf.mxu1 }
 0x17e   : > { %v1069_v35 = vmul.f32 %v3407_v57, %v3504_v16 }
 0x182   : > { %2742 = vrot.lane.b32.xlu2 %v2741_v37, %s3170_s17 }
 0x18a   : > { %884 = vrot.lane.b32.xlu2 %v3450_v40, %s3168_s14 }
 0x192   : > { %2752 = vrot.lane.b32.xlu2 %v2751_v44, %s3170_s17 }
 0x1cc   : > { %v2738_v49 = vpop.permute.xlu2 %2737 }
 0x1cd   : > { %v2740_v55 = vunpack.i.h.bf16 %v2738_v49  ;;  %v2739_v59 = vunpack.i.l.bf16 %v2738_v49 }
 0x1d4   : > { %v861_v50 = vpop.permute.xlu2 %860 }
 0x1d5   : > { %v866_v54 = vsel %vm837_vm10, %v861_v50, 0 }
 0x1dc   : > { %v2743_v51 = vpop.permute.xlu2 %2742 }
 0x1dd   : > { %v2745_v10 = vunpack.i.h.bf16 %v2743_v51  ;;  %v2744_v11 = vunpack.i.l.bf16 %v2743_v51 }
 0x1de   : > { %v836_v52 = vpop.permute.xlu0 %835 }
 0x1df   : > { %v842_v53 = vsel %vm837_vm10, %v836_v52, 0 }
 0x1e0   : > { %851 = vmatpush.bf16.xpose.msra.mxu3 %v842_v53 }
 0x1e4   : > { %v2733_v56 = vpop.permute.xlu1 %2732  ;;  %v885_v58 = vpop.permute.xlu2 %884 }
 0x1e5   : > { %v2735_v60 = vunpack.i.h.bf16 %v2733_v56  ;;  %v2734_v61 = vunpack.i.l.bf16 %v2733_v56  ;;  %v890_v62 = vsel %vm837_vm10, %v885_v58, 0 }
 0x1e6   : > { %899 = vmatpush.bf16.xpose.msrb.mxu0 %v890_v62 }
 0x1e7   : > { %v777_v63 = vsel %vm504_vm0, %v2735_v60, %v2740_v55  ;;  %v776_v2 = vsel %vm504_vm0, %v2734_v61, %v2739_v59  ;;  %2521 = vmatmul.msk.bf16.vlgmr.msra.gmra.mxu3 %vm837_vm10, %v3423_v12 }
 0x1e8   : > { %875 = vmatpush.bf16.xpose.msrb.mxu3 %v866_v54  ;;  %v780_v0 = vpack.c.bf16 %v777_v63, %v776_v2 }
 0x1e9   : > { %v2748_v7 = vpop.permute.xlu0 %2747 }
 0x1ea   : > { %2519 = vmatmul.msk.bf16.vlgmr.msrb.gmra.mxu2 %vm806_vm11, %v780_v0  ;;  %v2750_v8 = vunpack.i.h.bf16 %v2748_v7  ;;  %v2749_v9 = vunpack.i.l.bf16 %v2748_v7 }
 0x1ec   : > { %v909_v3 = vpop.permute.xlu1 %908  ;;  %v778_v1 = vsel %vm504_vm0, %v2744_v11, %v2749_v9  ;;  %v779_v4 = vsel %vm504_vm0, %v2745_v10, %v2750_v8  ;;  %v3541_v51 = vpop.permute.xlu2 %2752 }
 0x1ed   : > { %2523 = vmatmul.msk.bf16.vlgmr.msrb.gmra.mxu0 %vm837_vm10, %v726_v34  ;;  %v914_v6 = vsel %vm837_vm10, %v909_v3, 0  ;;  %v781_v12 = vpack.c.bf16 %v779_v4, %v778_v1  ;;  %v1068_v34 = vmul.f32 %v3407_v57, %v3502_v13 }
 0x1ee   : > { %923 = vmatpush.bf16.xpose.msrb.mxu1 %v914_v6 }
 0x1ef   : > { %v2756_v37 = vpack.i.bf16 %v1069_v35, %v1068_v34  ;;  %v2754_v34 = vunpack.i.l.bf16 %v3541_v51 }
 0x1f5   : > { %2524 = vmatmul.msk.bf16.vlgmr.msrb.gmra.mxu1 %vm837_vm10, %v3434_v26 }
 0x1f7   : > { %2522 = vmatmul.msk.bf16.vlgmr.msrb.gmra.mxu3 %vm837_vm10, %v3430_v21 }
 0x1fa   : > { %2520 = vmatmul.msk.bf16.gmra.mxu2 %vm806_vm11, %v781_v12 }
 0x26a   : > { %v853_v14 = vpop.f32.mrf.mxu3  ;;  %v901_v15 = vpop.f32.mrf.mxu0 }
 0x26d   : > { %v822_v17 = vpop.f32.mrf.mxu2 }
 0x26e   : > { %v854_v18 = vadd.f32 %v853_v14, %v822_v17 }
 0x270   : > { %v929_v19 = vsel %vm837_vm10, %v854_v18, -inf }
 0x271   : > { %930 = vmax.xlane.f32.xlu0 %v929_v19 }
 0x272   : > { %v855_v20 = vpop.f32.mrf.mxu3  ;;  %v903_v22 = vpop.f32.mrf.mxu0 }
 0x273   : > { %v925_v23 = vpop.f32.mrf.mxu1 }
 0x275   : > { %v824_v24 = vpop.f32.mrf.mxu2 }
 0x27a   : > { %v877_v25 = vpop.f32.mrf.mxu3 }
 0x27b   : > { %v878_v21 = vadd.f32 %v877_v25, %v824_v24  ;;  %v927_v26 = vpop.f32.mrf.mxu1 }
 0x27d   : > { %v827_v27 = vpop.f32.mrf.mxu2  ;;  %v932_v28 = vsel %vm837_vm10, %v878_v21, -inf }
 0x27e   : > { %v902_v29 = vadd.f32 %v901_v15, %v827_v27  ;;  %933 = vmax.xlane.f32.xlu2 %v932_v28 }
 0x280   : > { %v935_v30 = vsel %vm837_vm10, %v902_v29, -inf }
 0x281   : > { %936 = vmax.xlane.f32.xlu1 %v935_v30 }
 0x282   : > { %v879_v33 = vpop.f32.mrf.mxu3 }
 0x283   : > { %v2755_v33 = vunpack.i.h.bf16 %v3541_v51 }
 0x285   : > { %999 = vrot.lane.b32.xlu0 %v3441_v32, %s3169_s16  ;;  %v829_v38 = vpop.f32.mrf.mxu2 }
 0x286   : > { %v926_v42 = vadd.f32 %v925_v23, %v829_v38  ;;  %v1063_v38 = vmul.f32 %v3389_v39, %v3452_v41 }
 0x288   : > { %v938_v43 = vsel %vm837_vm10, %v926_v42, -inf }
 0x28d   : > { %1041 = vrot.lane.b32.xlu0 %v3438_v31, %s3169_s16 }
 0x295   : > { %1117 = vrot.lane.b32.xlu0 %v3426_v5, %s3171_s19 }
 0x296   : > { %2757 = vrot.lane.b32.xlu2 %v2756_v37, %s3170_s17  ;;  %v1062_v37 = vmul.f32 %v3389_v39, %v3447_v36 }
 0x29a   : > { %977 = vrot.lane.b32.xlu1 %v3426_v5, %s3169_s16 }
 0x2a2   : > { %1020 = vrot.lane.b32.xlu1 %v3450_v40, %s3169_s16 }
 0x2aa   : > { %1119 = vrot.lane.b32.xlu1 %v3426_v5, %s3172_s2 }
 0x2b2   : > { %1142 = vrot.lane.b32.xlu1 %v3441_v32, %s3172_s2 }
 0x2ba   : > { %1140 = vrot.lane.b32.xlu1 %v3441_v32, %s3171_s19 }
 0x2bf   : > { %939 = vmax.xlane.f32.xlu0 %v938_v43 }
 0x2c2   : > { %1186 = vrot.lane.b32.xlu1 %v3438_v31, %s3171_s19 }
 0x2ca   : > { %1278 = vrot.lane.b32.xlu1 %v3441_v32, %s3173_s5 }
 0x2d2   : > { %1320 = vrot.lane.b32.xlu1 %v3438_v31, %s3173_s5 }
 0x2d3   : > { %1165 = vrot.lane.b32.xlu0 %v3450_v40, %s3172_s2 }
 0x2da   : > { %1348 = vrot.lane.b32.xlu1 %v3407_v57, %s3170_s17 }
 0x2e4   : > { %v931_v44 = vpop.xlane.xlu0 %930 }
 0x2e5   : > { %v941_v49 = vsub.f32 %v854_v18, %v931_v44  ;;  %v1087_v44 = vsel %vm504_vm0, %v1063_v38, %v2755_v33 }
 0x2e7   : > { %v945_v50 = vmul.f32 1.442695, %v941_v49  ;;  %v1086_v49 = vsel %vm504_vm0, %v1062_v37, %v2754_v34 }
 0x2e9   : > { %2841 = vpow2.f32 %v945_v50 }
 0x2ef   : > { %v2842_v52 = vpop.eup %2841 }
 0x2f0   : > { %v953_v53 = vsel %vm837_vm10, %v2842_v52, 0.0 }
 0x2f1   : > { %954 = vadd.xlane.f32.xlu2 %v953_v53  ;;  %v934_v54 = vpop.xlane.xlu2 %933  ;;  %v1090_v53 = vpack.c.bf16 %v1087_v44, %v1086_v49 }
 0x2f2   : > { %v942_v55 = vsub.f32 %v878_v21, %v934_v54 }
 0x2f4   : > { %v947_v56 = vmul.f32 1.442695, %v942_v55  ;;  %v937_v58 = vpop.xlane.xlu1 %936 }
 0x2f5   : > { %v943_v59 = vsub.f32 %v902_v29, %v937_v58  ;;  %v1065_v58 = vmul.f32 %v3389_v39, %v3504_v16 }
 0x2f6   : > { %2843 = vpow2.f32 %v947_v56  ;;  %v1064_v56 = vmul.f32 %v3389_v39, %v3502_v13 }
 0x2f7   : > { %v949_v60 = vmul.f32 1.442695, %v943_v59  ;;  %v1000_v61 = vpop.permute.xlu0 %999 }
 0x2f8   : > { %v1005_v62 = vsel %vm982_vm12, %v1000_v61, 0 }
 0x2f9   : > { %2845 = vpow2.f32 %v949_v60  ;;  %1014 = vmatpush.bf16.msra.mxu2 %v1005_v62  ;;  %v2758_v25 = vpop.permute.xlu2 %2757 }
 0x2fa   : > { %v2760_v51 = vunpack.i.h.bf16 %v2758_v25  ;;  %v2759_v55 = vunpack.i.l.bf16 %v2758_v25 }
 0x2fc   : > { %v2844_v63 = vpop.eup %2843  ;;  %v1088_v59 = vsel %vm504_vm0, %v1064_v56, %v2759_v55  ;;  %v1089_v60 = vsel %vm504_vm0, %v1065_v58, %v2760_v51 }
 0x2fd   : > { %v956_v2 = vsel %vm837_vm10, %v2844_v63, 0.0  ;;  %v1091_v61 = vpack.c.bf16 %v1089_v60, %v1088_v59 }
 0x2fe   : > { %957 = vadd.xlane.f32.xlu0 %v956_v2 }
 0x2ff   : > { %v2846_v0 = vpop.eup %2845  ;;  %v1042_v3 = vpop.permute.xlu0 %1041 }
 0x300   : > { %v1047_v6 = vsel %vm982_vm12, %v1042_v3, 0  ;;  %v959_v7 = vsel %vm837_vm10, %v2846_v0, 0.0 }
 0x301   : > { %1056 = vmatpush.bf16.msra.mxu1 %v1047_v6  ;;  %960 = vadd.xlane.f32.xlu2 %v959_v7 }
 0x307   : > { %v1118_v15 = vpop.permute.xlu0 %1117 }
 0x30c   : > { %v978_v8 = vpop.permute.xlu1 %977 }
 0x30d   : > { %v984_v9 = vsel %vm982_vm12, %v978_v8, 0 }
 0x30e   : > { %993 = vmatpush.bf16.msra.mxu3 %v984_v9 }
 0x312   : > { %1102 = vmatpush.bf16.msrb.mxu3 %v3464_v45  ;;  %1163 = vrot.lane.b32.xlu0 %v3450_v40, %s3171_s19 }
 0x314   : > { %v1021_v10 = vpop.permute.xlu1 %1020 }
 0x315   : > { %v1026_v11 = vsel %vm982_vm12, %v1021_v10, 0 }
 0x316   : > { %1103 = vmatpush.bf16.msrb.mxu3 %v3470_v46  ;;  %1035 = vmatpush.bf16.msra.mxu0 %v1026_v11 }
 0x31a   : > { %1104 = vmatpush.bf16.msrb.mxu3 %v3476_v47  ;;  %1341 = vrot.lane.b32.xlu0 %v3389_v39, %s3170_s17  ;;  %s3178_s17 = smov 104  }
 0x31c   : > { %v1120_v1 = vpop.permute.xlu1 %1119 }
 0x31d   : > { %v1125_v4 = vsel %vm837_vm10, %v1120_v1, 0 }
 0x31e   : > { %1105 = vmatpush.bf16.msrb.mxu3 %v3482_v48  ;;  %1134 = vmatpush.bf16.xpose.msrb.mxu2 %v1125_v4 }
 0x324   : > { %v1143_v12 = vpop.permute.xlu1 %1142 }
 0x325   : > { %v1148_v14 = vsel %vm837_vm10, %v1143_v12, 0 }
 0x326   : > { %1157 = vmatpush.bf16.xpose.msrb.mxu0 %v1148_v14 }
 0x32c   : > { %v1141_v62 = vpop.permute.xlu1 %1140 }
 0x332   : > { %v940_v17 = vpop.xlane.xlu0 %939 }
 0x333   : > { %v944_v18 = vsub.f32 %v926_v42, %v940_v17 }
 0x335   : > { %v951_v19 = vmul.f32 1.442695, %v944_v18 }
 0x337   : > { %2847 = vpow2.f32 %v951_v19 }
 0x33d   : > { %v2848_v20 = vpop.eup %2847 }
 0x33e   : > { %v962_v22 = vsel %vm837_vm10, %v2848_v20, 0.0 }
 0x33f   : > { %963 = vadd.xlane.f32.xlu2 %v962_v22 }
 0x345   : > { %v1166_v23 = vpop.permute.xlu0 %1165 }
 0x346   : > { %v1171_v24 = vsel %vm837_vm10, %v1166_v23, 0 }
 0x347   : > { %1180 = vmatpush.bf16.xpose.msrb.mxu1 %v1171_v24 }
 0x357   : > { %1188 = vrot.lane.b32.xlu2 %v3438_v31, %s3172_s2 }
 0x35f   : > { %1257 = vrot.lane.b32.xlu2 %v3426_v5, %s3173_s5 }
 0x364   : > { %v955_v21 = vpop.xlane.xlu2 %954 }
 0x365   : > { %2849 = vrcp.f32 %v955_v21 }
 0x367   : > { %1404 = vrot.lane.b32.xlu2 %v3426_v5, %s3174_s12 }
 0x36b   : > { %v2850_v26 = vpop.eup %2849 }
 0x36c   : > { %v969_v27 = vmul.f32 %v2850_v26, %v2842_v52 }
 0x36e   : > { %v973_v28 = vpack.c.bf16 %v969_v27, %v969_v27 }
 0x36f   : > { %1427 = vrot.lane.b32.xlu2 %v3441_v32, %s3174_s12 }
 0x370   : > { %2525 = vmatmul.msk.bf16.vlgmr.msra.gmra.mxu3 %vm837_vm10, %v973_v28 }
 0x371   : > { %v958_v29 = vpop.xlane.xlu0 %957 }
 0x372   : > { %2851 = vrcp.f32 %v958_v29 }
 0x374   : > { %v961_v30 = vpop.xlane.xlu2 %960 }
 0x375   : > { %2853 = vrcp.f32 %v961_v30 }
 0x378   : > { %v2852_v35 = vpop.eup %2851 }
 0x379   : > { %v970_v42 = vmul.f32 %v2852_v35, %v2844_v63  ;;  %v1187_v63 = vpop.permute.xlu1 %1186 }
 0x37b   : > { %v2854_v43 = vpop.eup %2853  ;;  %v974_v50 = vpack.c.bf16 %v970_v42, %v970_v42 }
 0x37c   : > { %v971_v52 = vmul.f32 %v2854_v43, %v2846_v0 }
 0x37d   : > { %2526 = vmatmul.msk.bf16.vlgmr.msra.gmra.mxu2 %vm837_vm10, %v974_v50 }
 0x37e   : > { %v975_v54 = vpack.c.bf16 %v971_v52, %v971_v52 }
 0x380   : > { %2527 = vmatmul.msk.bf16.vlgmr.msra.gmra.mxu0 %vm837_vm10, %v975_v54  ;;  %2529 = vmatmul.msk.bf16.vlgmr.msrb.gmra.mxu3 %vm806_vm11, %v1090_v53 }
 0x381   : > { %v1279_v2 = vpop.permute.xlu1 %1278 }
 0x382   : > { %v1284_v1 = vsel %vm982_vm12, %v1279_v2, 0 }
 0x389   : > { %v1321_v6 = vpop.permute.xlu1 %1320 }
 0x38a   : > { %v1326_v10 = vsel %vm982_vm12, %v1321_v6, 0 }
 0x38d   : > { %2531 = vmatmul.msk.bf16.vlgmr.msrb.gmra.mxu2 %vm837_vm10, %v1118_v15  ;;  %v1164_v15 = vpop.permute.xlu0 %1163 }
 0x390   : > { %2530 = vmatmul.msk.bf16.gmra.mxu3 %vm806_vm11, %v1091_v61  ;;  %2532 = vmatmul.msk.bf16.vlgmr.msrb.gmra.mxu0 %vm837_vm10, %v1141_v62 }
 0x395   : > { %v1342_v56 = vpop.permute.xlu0 %1341 }
 0x396   : > { %v1344_v58 = vmul.f32 %v1342_v56, %v3447_v36  ;;  %v1345_v59 = vmul.f32 %v1342_v56, %v3452_v41 }
 0x398   : > { %v2761_v60 = vpack.i.bf16 %v1345_v59, %v1344_v58 }
 0x3b2   : > { %v964_v0 = vpop.xlane.xlu2 %963 }
 0x3b3   : > { %2855 = vrcp.f32 %v964_v0 }
 0x3b9   : > { %v2856_v3 = vpop.eup %2855 }
 0x3ba   : > { %v972_v7 = vmul.f32 %v2856_v3, %v2848_v20  ;;  %v1189_v8 = vpop.permute.xlu2 %1188 }
 0x3bb   : > { %v1194_v9 = vsel %vm837_vm10, %v1189_v8, 0 }
 0x3bc   : > { %v976_v11 = vpack.c.bf16 %v972_v7, %v972_v7  ;;  %1203 = vmatpush.bf16.xpose.msra.mxu2 %v1194_v9 }
 0x3be   : > { %2528 = vmatmul.msk.bf16.vlgmr.msra.gmra.mxu1 %vm837_vm10, %v976_v11 }
 0x3bf   : > { %1293 = vmatpush.bf16.msra.mxu1 %v1284_v1 }
 0x3c2   : > { %v1258_v4 = vpop.permute.xlu2 %1257 }
 0x3c3   : > { %v1263_v12 = vsel %vm982_vm12, %v1258_v4, 0  ;;  %2534 = vmatmul.msk.bf16.vlgmr.msra.gmra.mxu2 %vm837_vm10, %v1187_v63 }
 0x3c4   : > { %1335 = vmatpush.bf16.msrb.mxu2 %v1326_v10  ;;  %1272 = vmatpush.bf16.msra.mxu0 %v1263_v12  ;;  %v1346_v12 = vmul.f32 %v1342_v56, %v3502_v13 }
 0x3c8   : > { %1387 = vmatpush.bf16.msrb.mxu0 %v3464_v45 }
 0x3ca   : > { %v1405_v14 = vpop.permute.xlu2 %1404 }
 0x3cb   : > { %v1410_v17 = vsel %vm837_vm10, %v1405_v14, 0  ;;  %v1347_v14 = vmul.f32 %v1342_v56, %v3504_v16 }
 0x3cc   : > { %1388 = vmatpush.bf16.msrb.mxu0 %v3470_v46 }
 0x3ce   : > { %2533 = vmatmul.msk.bf16.vlgmr.msrb.gmra.mxu1 %vm837_vm10, %v1164_v15  ;;  %v2766_v15 = vpack.i.bf16 %v1347_v14, %v1346_v12 }
 0x3cf   : > { %1419 = vmatpush.bf16.xpose.msrb.mxu1 %v1410_v17  ;;  %v1349_v17 = vpop.permute.xlu1 %1348 }
 0x3d0   : > { %1389 = vmatpush.bf16.msrb.mxu0 %v3476_v47 }
 0x3d2   : > { %v1428_v61 = vpop.permute.xlu2 %1427 }
 0x3d3   : > { %v1433_v4 = vsel %vm837_vm10, %v1428_v61, 0 }
 0x3d4   : > { %1390 = vmatpush.bf16.msrb.mxu0 %v3482_v48 }
 0x3f3   : > { %v3603_v18 = vpop.f32.mrf.mxu3 }
 0x3fb   : > { %v997_v19 = vpop.f32.mrf.mxu3 }
 0x3fd   : > { %v3605_v20 = vpop.f32.mrf.mxu0 }
 0x400   : > { %v3607_v22 = vpop.f32.mrf.mxu2 }
 0x403   : > { %v1107_v23 = vpop.f32.mrf.mxu3 }
 0x405   : > { %v1039_v24 = vpop.f32.mrf.mxu0 }
 0x408   : > { %v1018_v25 = vpop.f32.mrf.mxu2 }
 0x40b   : > { %v1109_v21 = vpop.f32.mrf.mxu3 }
 0x40d   : > { %v1159_v26 = vpop.f32.mrf.mxu0 }
 0x40e   : > { %v1160_v27 = vadd.f32 %v1159_v26, %v1109_v21 }
 0x410   : > { %v1136_v28 = vpop.f32.mrf.mxu2  ;;  %v1212_v29 = vsel %vm837_vm10, %v1160_v27, -inf }
 0x411   : > { %v1137_v30 = vadd.f32 %v1136_v28, %v1107_v23  ;;  %1213 = vmax.xlane.f32.xlu0 %v1212_v29 }
 0x413   : > { %v1209_v33 = vsel %vm837_vm10, %v1137_v30, -inf  ;;  %v1112_v38 = vpop.f32.mrf.mxu3 }
 0x414   : > { %1210 = vmax.xlane.f32.xlu2 %v1209_v33 }
 0x415   : > { %v1161_v34 = vpop.f32.mrf.mxu0 }
 0x418   : > { %v1138_v35 = vpop.f32.mrf.mxu2 }
 0x41b   : > { %v1114_v43 = vpop.f32.mrf.mxu3 }
 0x425   : > { %1299 = vrot.lane.b32.xlu0 %v3450_v40, %s3173_s5 }
 0x43b   : > { %v3613_v37 = vpop.f32.mrf.mxu1 }
 0x443   : > { %v1060_v42 = vpop.f32.mrf.mxu1 }
 0x446   : > { %v1205_v44 = vpop.f32.mrf.mxu2 }
 0x447   : > { %v1206_v49 = vadd.f32 %v1205_v44, %v1114_v43 }
 0x449   : > { %v1218_v50 = vsel %vm837_vm10, %v1206_v49, -inf }
 0x44a   : > { %1219 = vmax.xlane.f32.xlu2 %v1218_v50 }
 0x44b   : > { %v1182_v52 = vpop.f32.mrf.mxu1 }
 0x44c   : > { %v1183_v53 = vadd.f32 %v1182_v52, %v1112_v38 }
 0x44e   : > { %v1207_v54 = vpop.f32.mrf.mxu2  ;;  %v1215_v51 = vsel %vm837_vm10, %v1183_v53, -inf }
 0x44f   : > { %1216 = vmax.xlane.f32.xlu1 %v1215_v51  ;;  %v1351_v51 = vmul.f32 %v1349_v17, %v3447_v36 }
 0x453   : > { %v1184_v55 = vpop.f32.mrf.mxu1 }
 0x454   : > { %v1352_v55 = vmul.f32 %v1349_v17, %v3452_v41 }
 0x462   : > { %2762 = vrot.lane.b32.xlu2 %v2761_v60, %s3168_s14 }
 0x468   : > { %1402 = vrot.lane.b32.xlu1 %v3426_v5, %s3175_s21 }
 0x484   : > { %v1214_v62 = vpop.xlane.xlu0 %1213 }
 0x485   : > { %v1222_v63 = vsub.f32 %v1160_v27, %v1214_v62 }
 0x487   : > { %v1227_v2 = vmul.f32 1.442695, %v1222_v63  ;;  %v1211_v0 = vpop.xlane.xlu2 %1210 }
 0x488   : > { %v1221_v3 = vsub.f32 %v1137_v30, %v1211_v0 }
 0x489   : > { %2857 = vpow2.f32 %v1227_v2 }
 0x48a   : > { %v1225_v6 = vmul.f32 1.442695, %v1221_v3 }
 0x48c   : > { %2859 = vpow2.f32 %v1225_v6  ;;  %v1353_v6 = vmul.f32 %v1349_v17, %v3502_v13 }
 0x48f   : > { %v2858_v7 = vpop.eup %2857 }
 0x490   : > { %v1236_v8 = vsel %vm837_vm10, %v2858_v7, 0.0 }
 0x491   : > { %1237 = vadd.xlane.f32.xlu2 %v1236_v8 }
 0x492   : > { %v2860_v9 = vpop.eup %2859 }
 0x493   : > { %v1233_v10 = vsel %vm837_vm10, %v2860_v9, 0.0 }
 0x494   : > { %1234 = vadd.xlane.f32.xlu1 %v1233_v10 }
 0x497   : > { %v1300_v11 = vpop.permute.xlu0 %1299 }
 0x498   : > { %v1305_v1 = vsel %vm982_vm12, %v1300_v11, 0 }
 0x499   : > { %1314 = vmatpush.bf16.msra.mxu3 %v1305_v1 }
 0x49d   : > { %1442 = vmatpush.bf16.xpose.msrb.mxu3 %v1433_v4 }
 0x4a9   : > { %1425 = vrot.lane.b32.xlu2 %v3441_v32, %s3175_s21 }
 0x4b1   : > { %2767 = vrot.lane.b32.xlu2 %v2766_v15, %s3168_s14 }
 0x4b9   : > { %1471 = vrot.lane.b32.xlu2 %v3438_v31, %s3175_s21 }
 0x4bd   : > { %v1220_v19 = vpop.xlane.xlu2 %1219 }
 0x4be   : > { %v1224_v23 = vsub.f32 %v1206_v49, %v1220_v19 }
 0x4c0   : > { %v1231_v24 = vmul.f32 1.442695, %v1224_v23 }
 0x4c1   : > { %1626 = vrot.lane.b32.xlu2 %v3389_v39, %s3169_s16 }
 0x4c2   : > { %2861 = vpow2.f32 %v1231_v24  ;;  %v1217_v25 = vpop.xlane.xlu1 %1216 }
 0x4c3   : > { %v1223_v21 = vsub.f32 %v1183_v53, %v1217_v25 }
 0x4c5   : > { %v1229_v26 = vmul.f32 1.442695, %v1223_v21  ;;  %v2763_v39 = vpop.permute.xlu2 %2762 }
 0x4c6   : > { %v2765_v53 = vunpack.i.h.bf16 %v2763_v39  ;;  %v2764_v54 = vunpack.i.l.bf16 %v2763_v39 }
 0x4c7   : > { %2863 = vpow2.f32 %v1229_v26 }
 0x4c8   : > { %v2862_v27 = vpop.eup %2861  ;;  %v1372_v58 = vsel %vm504_vm0, %v2765_v53, %v1352_v55  ;;  %v1371_v59 = vsel %vm504_vm0, %v2764_v54, %v1351_v51 }
 0x4c9   : > { %1563 = vrot.lane.b32.xlu2 %v3441_v32, %s3176_s15  ;;  %v1242_v28 = vsel %vm837_vm10, %v2862_v27, 0.0  ;;  %v1375_v60 = vpack.c.bf16 %v1372_v58, %v1371_v59 }
 0x4ca   : > { %1243 = vadd.xlane.f32.xlu0 %v1242_v28 }
 0x4cd   : > { %v2864_v29 = vpop.eup %2863 }
 0x4ce   : > { %v1239_v30 = vsel %vm837_vm10, %v2864_v29, 0.0 }
 0x4cf   : > { %1240 = vadd.xlane.f32.xlu1 %v1239_v30 }
 0x4da   : > { %v1403_v33 = vpop.permute.xlu1 %1402 }
 0x4de   : > { %1448 = vrot.lane.b32.xlu0 %v3450_v40, %s3175_s21 }
 0x4e6   : > { %1633 = vrot.lane.b32.xlu0 %v3407_v57, %s3169_s16 }
 0x4e8   : > { %1450 = vrot.lane.b32.xlu1 %v3450_v40, %s3174_s12 }
 0x4f0   : > { %1473 = vrot.lane.b32.xlu1 %v3438_v31, %s3174_s12  ;;  %s3103_s12 = scalar_lea.hbm %s3962_s20, 64 }
 0x4f8   : > { %1542 = vrot.lane.b32.xlu1 %v3426_v5, %s3176_s15 }
 0x504   : > { %v1238_v34 = vpop.xlane.xlu2 %1237 }
 0x505   : > { %2865 = vrcp.f32 %v1238_v34 }
 0x507   : > { %v1235_v35 = vpop.xlane.xlu1 %1234 }
 0x508   : > { %2867 = vrcp.f32 %v1235_v35 }
 0x50b   : > { %v2866_v38 = vpop.eup %2865 }
 0x50c   : > { %v1250_v42 = vmul.f32 %v2866_v38, %v2858_v7  ;;  %v1426_v43 = vpop.permute.xlu2 %1425  ;;  %v1354_v7 = vmul.f32 %v1349_v17, %v3504_v16 }
 0x50e   : > { %v2868_v44 = vpop.eup %2867  ;;  %v1254_v57 = vpack.c.bf16 %v1250_v42, %v1250_v42 }
 0x50f   : > { %v1249_v49 = vmul.f32 %v2868_v44, %v2860_v9 }
 0x510   : > { %2536 = vmatmul.msk.bf16.vlgmr.msra.gmra.mxu1 %vm837_vm10, %v1254_v57 }
 0x511   : > { %v1253_v50 = vpack.c.bf16 %v1249_v49, %v1249_v49 }
 0x513   : > { %2535 = vmatmul.msk.bf16.vlgmr.msra.gmra.mxu0 %vm837_vm10, %v1253_v50 }
 0x514   : > { %v2768_v52 = vpop.permute.xlu2 %2767 }
 0x515   : > { %v2770_v0 = vunpack.i.h.bf16 %v2768_v52  ;;  %v2769_v3 = vunpack.i.l.bf16 %v2768_v52 }
 0x517   : > { %v1373_v8 = vsel %vm504_vm0, %v2769_v3, %v1353_v6  ;;  %v1374_v9 = vsel %vm504_vm0, %v2770_v0, %v1354_v7 }
 0x518   : > { %v1376_v10 = vpack.c.bf16 %v1374_v9, %v1373_v8 }
 0x51c   : > { %v1472_v56 = vpop.permute.xlu2 %1471 }
 0x520   : > { %2541 = vmatmul.msk.bf16.vlgmr.msrb.gmra.mxu1 %vm837_vm10, %v1403_v33 }
 0x523   : > { %2539 = vmatmul.msk.bf16.vlgmr.msrb.gmra.mxu0 %vm806_vm11, %v1375_v60 }
 0x524   : > { %v3657_v61 = vpop.permute.xlu2 %1626 }
 0x525   : > { %v1629_v62 = vmul.f32 %v3657_v61, %v3447_v36  ;;  %v1630_v63 = vmul.f32 %v3657_v61, %v3452_v41 }
 0x527   : > { %v2771_v2 = vpack.i.bf16 %v1630_v63, %v1629_v62 }
 0x529   : > { %2772 = vrot.lane.b32.xlu2 %v2771_v2, %s3169_s16 }
 0x52c   : > { %v1564_v17 = vpop.permute.xlu2 %1563 }
 0x52d   : > { %v1569_v21 = vsel %vm982_vm12, %v1564_v17, 0 }
 0x533   : > { %2540 = vmatmul.msk.bf16.gmra.mxu0 %vm806_vm11, %v1376_v10 }
 0x53d   : > { %v1244_v11 = vpop.xlane.xlu0 %1243 }
 0x53e   : > { %2869 = vrcp.f32 %v1244_v11 }
 0x542   : > { %v1241_v1 = vpop.xlane.xlu1 %1240 }
 0x543   : > { %2871 = vrcp.f32 %v1241_v1 }
 0x544   : > { %v2870_v4 = vpop.eup %2869 }
 0x545   : > { %v1252_v12 = vmul.f32 %v2870_v4, %v2862_v27 }
 0x547   : > { %v1256_v14 = vpack.c.bf16 %v1252_v12, %v1252_v12 }
 0x549   : > { %v2872_v15 = vpop.eup %2871  ;;  %2538 = vmatmul.msk.bf16.vlgmr.msrb.gmra.mxu2 %vm837_vm10, %v1256_v14 }
 0x54a   : > { %v1251_v19 = vmul.f32 %v2872_v15, %v2864_v29 }
 0x54c   : > { %v1255_v23 = vpack.c.bf16 %v1251_v19, %v1251_v19 }
 0x54e   : > { %2537 = vmatmul.msk.bf16.vlgmr.msra.gmra.mxu3 %vm837_vm10, %v1255_v23 }
 0x550   : > { %v1449_v26 = vpop.permute.xlu0 %1448 }
 0x558   : > { %v1634_v7 = vpop.permute.xlu0 %1633 }
 0x559   : > { %v1636_v8 = vmul.f32 %v1634_v7, %v3447_v36  ;;  %v1637_v9 = vmul.f32 %v1634_v7, %v3452_v41  ;;  %v1631_v36 = vmul.f32 %v3657_v61, %v3502_v13  ;;  %v1632_v41 = vmul.f32 %v3657_v61, %v3504_v16 }
 0x55a   : > { %v1451_v24 = vpop.permute.xlu1 %1450  ;;  %v1638_v12 = vmul.f32 %v1634_v7, %v3502_v13  ;;  %v1639_v14 = vmul.f32 %v1634_v7, %v3504_v16 }
 0x55b   : > { %v1456_v25 = vsel %vm837_vm10, %v1451_v24, 0  ;;  %v2776_v10 = vpack.i.bf16 %v1637_v9, %v1636_v8  ;;  %v2781_v1 = vpack.i.bf16 %v1632_v41, %v1631_v36 }
 0x55c   : > { %1465 = vmatpush.bf16.xpose.msra.mxu2 %v1456_v25  ;;  %v2786_v19 = vpack.i.bf16 %v1639_v14, %v1638_v12 }
 0x55e   : > { %2542 = vmatmul.msk.bf16.vlgmr.msrb.gmra.mxu3 %vm837_vm10, %v1426_v43 }
 0x562   : > { %v1474_v27 = vpop.permute.xlu1 %1473 }
 0x563   : > { %v1479_v28 = vsel %vm837_vm10, %v1474_v27, 0  ;;  %2543 = vmatmul.msk.bf16.vlgmr.msra.gmra.mxu2 %vm837_vm10, %v1449_v26 }
 0x564   : > { %1578 = vmatpush.bf16.msrb.mxu2 %v1569_v21  ;;  %1488 = vmatpush.bf16.xpose.msra.mxu1 %v1479_v28 }
 0x56a   : > { %v1543_v29 = vpop.permute.xlu1 %1542 }
 0x56b   : > { %v1548_v30 = vsel %vm982_vm12, %v1543_v29, 0  ;;  %2544 = vmatmul.msk.bf16.vlgmr.msra.gmra.mxu1 %vm837_vm10, %v1472_v56 }
 0x56c   : > { %1557 = vmatpush.bf16.msra.mxu3 %v1548_v30 }
 0x570   : > { %1688 = vmatpush.bf16.msrb.mxu3 %v3464_v45 }
 0x574   : > { %1689 = vmatpush.bf16.msrb.mxu3 %v3470_v46 }
 0x578   : > { %1690 = vmatpush.bf16.msrb.mxu3 %v3476_v47 }
 0x57c   : > { %1691 = vmatpush.bf16.msrb.mxu3 %v3482_v48 }
 0x583   : > { %v2773_v17 = vpop.permute.xlu2 %2772 }
 0x58d   : > { %v3682_v39 = vpop.f32.mrf.mxu1 }
 0x590   : > { %v3684_v33 = vpop.f32.mrf.mxu0 }
 0x591   : > { %v2791_v34 = vpack.i.bf16 %v3682_v39, %v3684_v33 }
 0x595   : > { %v1297_v35 = vpop.f32.mrf.mxu1 }
 0x598   : > { %v1276_v38 = vpop.f32.mrf.mxu0 }
 0x59d   : > { %v1421_v42 = vpop.f32.mrf.mxu1 }
 0x5a0   : > { %v1392_v43 = vpop.f32.mrf.mxu0 }
 0x5a1   : > { %v1422_v44 = vadd.f32 %v1421_v42, %v1392_v43 }
 0x5a3   : > { %v1494_v45 = vsel %vm837_vm10, %v1422_v44, -inf }
 0x5a4   : > { %1495 = vmax.xlane.f32.xlu1 %v1494_v45 }
 0x5a5   : > { %v1423_v46 = vpop.f32.mrf.mxu1 }
 0x5a8   : > { %v1394_v49 = vpop.f32.mrf.mxu0 }
 0x5b0   : > { %v1397_v53 = vpop.f32.mrf.mxu0 }
 0x5b8   : > { %v1399_v59 = vpop.f32.mrf.mxu0 }
 0x5cc   : > { %v3689_v57 = vpop.f32.mrf.mxu2 }
 0x5d1   : > { %v3691_v47 = vpop.f32.mrf.mxu3 }
 0x5d2   : > { %v2806_v48 = vpack.i.bf16 %v3689_v57, %v3691_v47 }
 0x5d4   : > { %v1339_v50 = vpop.f32.mrf.mxu2 }
 0x5d9   : > { %v1318_v52 = vpop.f32.mrf.mxu3 }
 0x5e1   : > { %v1444_v54 = vpop.f32.mrf.mxu3 }
 0x5e2   : > { %v1445_v51 = vadd.f32 %v1444_v54, %v1394_v49 }
 0x5e4   : > { %v1497_v55 = vsel %vm837_vm10, %v1445_v51, -inf }
 0x5e5   : > { %1498 = vmax.xlane.f32.xlu2 %v1497_v55 }
 0x5e6   : > { %v1467_v56 = vpop.f32.mrf.mxu2 }
 0x5e7   : > { %v1468_v58 = vadd.f32 %v1467_v56, %v1397_v53 }
 0x5e8   : > { %v1490_v60 = vpop.f32.mrf.mxu1 }
 0x5e9   : > { %v1491_v62 = vadd.f32 %v1490_v60, %v1399_v59  ;;  %v1446_v63 = vpop.f32.mrf.mxu3  ;;  %v1500_v2 = vsel %vm837_vm10, %v1468_v58, -inf }
 0x5ea   : > { %1501 = vmax.xlane.f32.xlu0 %v1500_v2 }
 0x5eb   : > { %v1503_v0 = vsel %vm837_vm10, %v1491_v62, -inf }
 0x5ec   : > { %1504 = vmax.xlane.f32.xlu1 %v1503_v0  ;;  %v2775_v0 = vunpack.i.h.bf16 %v2773_v17 }
 0x5ee   : > { %v1469_v3 = vpop.f32.mrf.mxu2 }
 0x5ef   : > { %v2774_v3 = vunpack.i.l.bf16 %v2773_v17 }
 0x5f0   : > { %v1492_v6 = vpop.f32.mrf.mxu1 }
 0x5fd   : > { %2777 = vrot.lane.b32.xlu2 %v2776_v10, %s3168_s14 }
 0x5fe   : > { %1728 = vrot.lane.b32.xlu0 %v3441_v32, %s3177_s26 }
 0x605   : > { %1584 = vrot.lane.b32.xlu1 %v3450_v40, %s3176_s15  ;;  %1705 = vrot.lane.b32.xlu2 %v3426_v5, %s3177_s26 }
 0x606   : > { %1774 = vrot.lane.b32.xlu0 %v3438_v31, %s3177_s26 }
 0x60d   : > { %1703 = vrot.lane.b32.xlu2 %v3426_v5, %s3178_s17 }
 0x615   : > { %1605 = vrot.lane.b32.xlu2 %v3438_v31, %s3176_s15  ;;  %s484_s15 = sand.u32 1, %s3149_s22  }
 0x616   : > { %s2339_s30 = scalar_lea.sflag [#allocation4], %s484_s15 }
 0x617   : > { %v1496_v11 = vpop.xlane.xlu1 %1495 }
 0x618   : > { %v1506_v4 = vsub.f32 %v1422_v44, %v1496_v11 }
 0x61a   : > { %v1510_v15 = vmul.f32 1.442695, %v1506_v4 }
 0x61c   : > { %2873 = vpow2.f32 %v1510_v15 }
 0x61d   : > { %2782 = vrot.lane.b32.xlu2 %v2781_v1, %s3169_s16  ;;  %s3180_s16 = smov 8  }
 0x622   : > { %v2874_v23 = vpop.eup %2873 }
 0x623   : > { %v1518_v61 = vsel %vm837_vm10, %v2874_v23, 0.0 }
 0x625   : > { %2787 = vrot.lane.b32.xlu2 %v2786_v19, %s3168_s14  ;;  %s3179_s14 = smov 40  }
 0x62d   : > { %1726 = vrot.lane.b32.xlu2 %v3441_v32, %s3178_s17 }
 0x62f   : > { %1519 = vadd.xlane.f32.xlu1 %v1518_v61 }
 0x635   : > { %1772 = vrot.lane.b32.xlu2 %v3438_v31, %s3178_s17 }
 0x658   : > { %v1499_v24 = vpop.xlane.xlu2 %1498 }
 0x659   : > { %v1507_v13 = vsub.f32 %v1445_v51, %v1499_v24 }
 0x65b   : > { %v1512_v25 = vmul.f32 1.442695, %v1507_v13 }
 0x65d   : > { %2875 = vpow2.f32 %v1512_v25  ;;  %v1502_v16 = vpop.xlane.xlu0 %1501 }
 0x65e   : > { %v1508_v21 = vsub.f32 %v1468_v58, %v1502_v16 }
 0x65f   : > { %v1505_v26 = vpop.xlane.xlu1 %1504 }
 0x660   : > { %v1514_v27 = vmul.f32 1.442695, %v1508_v21  ;;  %v1509_v28 = vsub.f32 %v1491_v62, %v1505_v26  ;;  %v2778_v29 = vpop.permute.xlu2 %2777 }
 0x661   : > { %v2780_v63 = vunpack.i.h.bf16 %v2778_v29  ;;  %v2779_v2 = vunpack.i.l.bf16 %v2778_v29 }
 0x662   : > { %2877 = vpow2.f32 %v1514_v27  ;;  %v1516_v30 = vmul.f32 1.442695, %v1509_v28 }
 0x663   : > { %v2876_v35 = vpop.eup %2875  ;;  %v1673_v7 = vsel %vm504_vm0, %v2775_v0, %v2780_v63  ;;  %v1672_v8 = vsel %vm504_vm0, %v2774_v3, %v2779_v2 }
 0x664   : > { %2879 = vpow2.f32 %v1516_v30  ;;  %v1521_v38 = vsel %vm837_vm10, %v2876_v35, 0.0  ;;  %v1676_v9 = vpack.c.bf16 %v1673_v7, %v1672_v8 }
 0x665   : > { %1522 = vadd.xlane.f32.xlu1 %v1521_v38 }
 0x668   : > { %v2878_v42 = vpop.eup %2877  ;;  %v1706_v43 = vpop.permute.xlu2 %1705 }
 0x669   : > { %v1711_v44 = vsel %vm837_vm10, %v1706_v43, 0  ;;  %v1524_v45 = vsel %vm837_vm10, %v2878_v42, 0.0 }
 0x66a   : > { %v2880_v46 = vpop.eup %2879  ;;  %1720 = vmatpush.bf16.xpose.msra.mxu2 %v1711_v44  ;;  %1525 = vadd.xlane.f32.xlu0 %v1524_v45 }
 0x66b   : > { %v1527_v49 = vsel %vm837_vm10, %v2880_v46, 0.0 }
 0x66d   : > { %1528 = vadd.xlane.f32.xlu1 %v1527_v49 }
 0x670   : > { %v1704_v50 = vpop.permute.xlu2 %1703  ;;  %v1729_v52 = vpop.permute.xlu0 %1728 }
 0x671   : > { %v1734_v55 = vsel %vm837_vm10, %v1729_v52, 0 }
 0x677   : > { %v1585_v53 = vpop.permute.xlu1 %1584 }
 0x678   : > { %v1590_v54 = vsel %vm982_vm12, %v1585_v53, 0  ;;  %v1606_v51 = vpop.permute.xlu2 %1605  ;;  %v1775_v15 = vpop.permute.xlu0 %1774 }
 0x679   : > { %v1611_v56 = vsel %vm982_vm12, %v1606_v51, 0  ;;  %1599 = vmatpush.bf16.msra.mxu0 %v1590_v54  ;;  %v1780_v16 = vsel %vm837_vm10, %v1775_v15, 0 }
 0x67a   : > { %1620 = vmatpush.bf16.msrb.mxu1 %v1611_v56 }
 0x67d   : > { %1743 = vmatpush.bf16.xpose.msrb.mxu0 %v1734_v55 }
 0x67e   : > { %1751 = vrot.lane.b32.xlu0 %v3450_v40, %s3177_s26  ;;  %s2480_s26 = sshll.u32 %s484_s15, 5 }
 0x680   : > { %v2783_v6 = vpop.permute.xlu2 %2782 }
 0x681   : > { %v2785_v11 = vunpack.i.h.bf16 %v2783_v6  ;;  %v2784_v1 = vunpack.i.l.bf16 %v2783_v6 }
 0x686   : > { %1749 = vrot.lane.b32.xlu1 %v3450_v40, %s3178_s17 }
 0x688   : > { %v2788_v10 = vpop.permute.xlu2 %2787 }
 0x689   : > { %v2790_v36 = vunpack.i.h.bf16 %v2788_v10  ;;  %v2789_v41 = vunpack.i.l.bf16 %v2788_v10 }
 0x68b   : > { %v1674_v4 = vsel %vm504_vm0, %v2784_v1, %v2789_v41  ;;  %v1675_v12 = vsel %vm504_vm0, %v2785_v11, %v2790_v36 }
 0x68c   : > { %v1677_v14 = vpack.c.bf16 %v1675_v12, %v1674_v4 }
 0x690   : > { %v1727_v38 = vpop.permute.xlu2 %1726 }
 0x6a2   : > { %v1520_v58 = vpop.xlane.xlu1 %1519 }
 0x6a3   : > { %2881 = vrcp.f32 %v1520_v58 }
 0x6a9   : > { %v2882_v59 = vpop.eup %2881 }
 0x6aa   : > { %v1534_v60 = vmul.f32 %v2882_v59, %v2874_v23 }
 0x6ac   : > { %v1538_v62 = vpack.c.bf16 %v1534_v60, %v1534_v60 }
 0x6ae   : > { %2545 = vmatmul.msk.bf16.vlgmr.msra.gmra.mxu3 %vm837_vm10, %v1538_v62 }
 0x6be   : > { %2549 = vmatmul.msk.bf16.vlgmr.msrb.gmra.mxu3 %vm806_vm11, %v1676_v9 }
 0x6ce   : > { %2550 = vmatmul.msk.bf16.gmra.mxu3 %vm806_vm11, %v1677_v14 }
 0x6d8   : > { %v1523_v19 = vpop.xlane.xlu1 %1522 }
 0x6d9   : > { %2883 = vrcp.f32 %v1523_v19 }
 0x6dd   : > { %v1526_v23 = vpop.xlane.xlu0 %1525 }
 0x6de   : > { %2885 = vrcp.f32 %v1526_v23 }
 0x6df   : > { %v2884_v61 = vpop.eup %2883 }
 0x6e0   : > { %v1535_v17 = vmul.f32 %v2884_v61, %v2876_v35  ;;  %v1529_v24 = vpop.xlane.xlu1 %1528 }
 0x6e1   : > { %2887 = vrcp.f32 %v1529_v24 }
 0x6e2   : > { %v1539_v13 = vpack.c.bf16 %v1535_v17, %v1535_v17 }
 0x6e4   : > { %v2886_v25 = vpop.eup %2885  ;;  %2546 = vmatmul.msk.bf16.vlgmr.msrb.gmra.mxu2 %vm837_vm10, %v1539_v13 }
 0x6e5   : > { %v1536_v21 = vmul.f32 %v2886_v25, %v2878_v42  ;;  %1789 = vmatpush.bf16.xpose.msrb.mxu2 %v1780_v16  ;;  %v1773_v42 = vpop.permute.xlu2 %1772 }
 0x6e7   : > { %v2888_v26 = vpop.eup %2887  ;;  %v1540_v27 = vpack.c.bf16 %v1536_v21, %v1536_v21 }
 0x6e8   : > { %v1537_v28 = vmul.f32 %v2888_v26, %v2880_v46 }
 0x6e9   : > { %2547 = vmatmul.msk.bf16.vlgmr.msra.gmra.mxu0 %vm837_vm10, %v1540_v27 }
 0x6ea   : > { %v1541_v29 = vpack.c.bf16 %v1537_v28, %v1537_v28 }
 0x6ec   : > { %2548 = vmatmul.msk.bf16.vlgmr.msrb.gmra.mxu1 %vm837_vm10, %v1541_v29 }
 0x6f0   : > { %v1752_v30 = vpop.permute.xlu0 %1751 }
 0x6f1   : > { %v1757_v35 = vsel %vm837_vm10, %v1752_v30, 0 }
 0x6f2   : > { %1766 = vmatpush.bf16.xpose.msra.mxu1 %v1757_v35 }
 0x6f4   : > { %2551 = vmatmul.msk.bf16.vlgmr.msra.gmra.mxu2 %vm837_vm10, %v1704_v50 }
 0x6f8   : > { %v1750_v43 = vpop.permute.xlu1 %1749 }
 0x6f9   : > { %2552 = vmatmul.msk.bf16.vlgmr.msrb.gmra.mxu0 %vm837_vm10, %v1727_v38 }
 0x6fc   : > { %2553 = vmatmul.msk.bf16.vlgmr.msra.gmra.mxu1 %vm837_vm10, %v1750_v43 }
 0x704   : > { %2554 = vmatmul.msk.bf16.vlgmr.msrb.gmra.mxu2 %vm837_vm10, %v1773_v42 }
 0x731   : > { %v3753_v44 = vpop.f32.mrf.mxu3 }
 0x739   : > { %v1561_v45 = vpop.f32.mrf.mxu3 }
 0x741   : > { %v1693_v46 = vpop.f32.mrf.mxu3 }
 0x749   : > { %v1695_v55 = vpop.f32.mrf.mxu3 }
 0x751   : > { %v1698_v2 = vpop.f32.mrf.mxu3 }
 0x759   : > { %v1700_v41 = vpop.f32.mrf.mxu3 }
 0x766   : > { %v3755_v49 = vpop.f32.mrf.mxu0 }
 0x767   : > { %v3757_v52 = vpop.f32.mrf.mxu2 }
 0x768   : > { %v2796_v50 = vpack.i.bf16 %v3757_v52, %v3753_v44 }
 0x769   : > { %v3761_v53 = vpop.f32.mrf.mxu1 }
 0x76a   : > { %v2811_v54 = vpack.i.bf16 %v3761_v53, %v3755_v49 }
 0x76e   : > { %v1603_v51 = vpop.f32.mrf.mxu0 }
 0x76f   : > { %v1582_v56 = vpop.f32.mrf.mxu2 }
 0x771   : > { %v1624_v58 = vpop.f32.mrf.mxu1 }
 0x776   : > { %v1745_v59 = vpop.f32.mrf.mxu0 }
 0x777   : > { %v1746_v60 = vadd.f32 %v1745_v59, %v1695_v55  ;;  %v1722_v62 = vpop.f32.mrf.mxu2 }
 0x778   : > { %v1723_v63 = vadd.f32 %v1722_v62, %v1693_v46 }
 0x779   : > { %v1768_v0 = vpop.f32.mrf.mxu1  ;;  %v1798_v3 = vsel %vm837_vm10, %v1746_v60, -inf }
 0x77a   : > { %v1769_v6 = vadd.f32 %v1768_v0, %v1698_v2  ;;  %1799 = vmax.xlane.f32.xlu2 %v1798_v3  ;;  %v1795_v7 = vsel %vm837_vm10, %v1723_v63, -inf }
 0x77b   : > { %1796 = vmax.xlane.f32.xlu0 %v1795_v7 }
 0x77c   : > { %v1801_v8 = vsel %vm837_vm10, %v1769_v6, -inf }
 0x77d   : > { %1802 = vmax.xlane.f32.xlu1 %v1801_v8 }
 0x77e   : > { %v1747_v9 = vpop.f32.mrf.mxu0 }
 0x77f   : > { %v1724_v10 = vpop.f32.mrf.mxu2  ;;  %v2611_v9 = vld [vmem:[#allocation5 + $0x8] sm:$0xff] }
 0x781   : > { %v1770_v36 = vpop.f32.mrf.mxu1 }
 0x787   : > { %v1791_v11 = vpop.f32.mrf.mxu2 }
 0x788   : > { %v1792_v1 = vadd.f32 %v1791_v11, %v1700_v41 }
 0x78a   : > { %v1804_v4 = vsel %vm837_vm10, %v1792_v1, -inf }
 0x78b   : > { %1805 = vmax.xlane.f32.xlu0 %v1804_v4  ;;  %v2610_v4 = vld [vmem:[#allocation5] sm:$0xff] }
 0x78f   : > { %v1793_v12 = vpop.f32.mrf.mxu2 }
 0x792   : > { %1843 = vrot.lane.b32.xlu2 %v3426_v5, %s3179_s14 }
 0x7ed   : > { %v1800_v14 = vpop.xlane.xlu2 %1799 }
 0x7ee   : > { %v1808_v15 = vsub.f32 %v1746_v60, %v1800_v14  ;;  %v1797_v19 = vpop.xlane.xlu0 %1796 }
 0x7ef   : > { %v1807_v23 = vsub.f32 %v1723_v63, %v1797_v19 }
 0x7f0   : > { %v1813_v61 = vmul.f32 1.442695, %v1808_v15  ;;  %v1803_v17 = vpop.xlane.xlu1 %1802 }
 0x7f1   : > { %v1811_v24 = vmul.f32 1.442695, %v1807_v23  ;;  %v1809_v13 = vsub.f32 %v1769_v6, %v1803_v17 }
 0x7f2   : > { %2889 = vpow2.f32 %v1813_v61 }
 0x7f3   : > { %2891 = vpow2.f32 %v1811_v24  ;;  %v1815_v25 = vmul.f32 1.442695, %v1809_v13 }
 0x7f5   : > { %2893 = vpow2.f32 %v1815_v25  ;;  %v1844_v16 = vpop.permute.xlu2 %1843 }
 0x7f6   : > { %v1849_v21 = vsel %vm982_vm12, %v1844_v16, 0 }
 0x7f7   : > { %1858 = vmatpush.bf16.msra.mxu0 %v1849_v21 }
 0x7f8   : > { %v2890_v26 = vpop.eup %2889 }
 0x7f9   : > { %v2892_v27 = vpop.eup %2891  ;;  %v1822_v5 = vsel %vm837_vm10, %v2890_v26, 0.0 }
 0x7fa   : > { %1823 = vadd.xlane.f32.xlu0 %v1822_v5  ;;  %v1819_v28 = vsel %vm837_vm10, %v2892_v27, 0.0 }
 0x7fb   : > { %v2894_v29 = vpop.eup %2893  ;;  %1820 = vadd.xlane.f32.xlu2 %v1819_v28  ;;  %2019 = vmatpush.bf16.msrb.mxu0 %v2611_v9 }
 0x7fc   : > { %v1825_v30 = vsel %vm837_vm10, %v2894_v29, 0.0 }
 0x7fd   : > { %1826 = vadd.xlane.f32.xlu1 %v1825_v30 }
 0x7fe   : > { %v1806_v35 = vpop.xlane.xlu0 %1805 }
 0x7ff   : > { %v1810_v38 = vsub.f32 %v1792_v1, %v1806_v35  ;;  %2020 = vmatpush.bf16.msrb.mxu0 %v2610_v4  ;;  %v2613_v4 = vld [vmem:[#allocation10 + $0x8] sm:$0xff] }
 0x801   : > { %v1817_v43 = vmul.f32 1.442695, %v1810_v38 }
 0x803   : > { %2895 = vpow2.f32 %v1817_v43 }
 0x809   : > { %v2896_v42 = vpop.eup %2895 }
 0x80a   : > { %v1828_v45 = vsel %vm837_vm10, %v2896_v42, 0.0 }
 0x80b   : > { %1829 = vadd.xlane.f32.xlu1 %v1828_v45 }
 0x80e   : > { %1864 = vrot.lane.b32.xlu0 %v3441_v32, %s3179_s14 }
 0x813   : > { %1885 = vrot.lane.b32.xlu2 %v3450_v40, %s3179_s14 }
 0x816   : > { %2792 = vrot.lane.b32.xlu0 %v2791_v34, %s3180_s16 }
 0x81b   : > { %2797 = vrot.lane.b32.xlu2 %v2796_v50, %s3181_s28 }
 0x823   : > { %2807 = vrot.lane.b32.xlu2 %v2806_v48, %s3180_s16 }
 0x824   : > { %1906 = vrot.lane.b32.xlu1 %v3438_v31, %s3179_s14 }
 0x86d   : > { %v1824_v39 = vpop.xlane.xlu0 %1823 }
 0x86e   : > { %v1821_v32 = vpop.xlane.xlu2 %1820 }
 0x86f   : > { %2897 = vrcp.f32 %v1821_v32 }
 0x870   : > { %v1827_v40 = vpop.xlane.xlu1 %1826 }
 0x871   : > { %2899 = vrcp.f32 %v1827_v40 }
 0x872   : > { %2901 = vrcp.f32 %v1824_v39 }
 0x875   : > { %v2898_v33 = vpop.eup %2897 }
 0x876   : > { %v1835_v34 = vmul.f32 %v2898_v33, %v2892_v27  ;;  %v1886_v46 = vpop.permute.xlu2 %1885 }
 0x877   : > { %v2900_v51 = vpop.eup %2899  ;;  %v1891_v44 = vsel %vm982_vm12, %v1886_v46, 0 }
 0x878   : > { %v1839_v52 = vpack.c.bf16 %v1835_v34, %v1835_v34  ;;  %v1837_v50 = vmul.f32 %v2900_v51, %v2894_v29  ;;  %1900 = vmatpush.bf16.msra.mxu3 %v1891_v44  ;;  %v2902_v47 = vpop.eup %2901 }
 0x879   : > { %v1836_v31 = vmul.f32 %v2902_v47, %v2890_v26 }
 0x87a   : > { %v1841_v57 = vpack.c.bf16 %v1837_v50, %v1837_v50  ;;  %2555 = vmatmul.msk.bf16.vlgmr.msra.gmra.mxu0 %vm837_vm10, %v1839_v52  ;;  %v2930_v52 = vld [vmem:[%s3353_s24 + $0x8] sm:$0xff] }
 0x87b   : > { %v1840_v56 = vpack.c.bf16 %v1836_v31, %v1836_v31 }
 0x87c   : > { %2557 = vmatmul.msk.bf16.vlgmr.msra.gmra.mxu3 %vm837_vm10, %v1841_v57 }
 0x87e   : > { %v1830_v58 = vpop.xlane.xlu1 %1829  ;;  %v2798_v14 = vpop.permute.xlu2 %2797 }
 0x87f   : > { %2903 = vrcp.f32 %v1830_v58  ;;  %v2800_v17 = vunpack.i.h.bf16 %v2798_v14  ;;  %v2799_v49 = vunpack.i.l.bf16 %v2798_v14 }
 0x880   : > { %v1865_v48 = vpop.permute.xlu0 %1864 }
 0x881   : > { %v1870_v55 = vsel %vm982_vm12, %v1865_v48, 0  ;;  %v2931_v48 = vld [vmem:[%s3353_s24 + $0x10] sm:$0xff] }
 0x882   : > { %1879 = vmatpush.bf16.msrb.mxu1 %v1870_v55 }
 0x885   : > { %2556 = vmatmul.msk.bf16.vlgmr.msrb.gmra.mxu1 %vm837_vm10, %v1840_v56  ;;  %v2904_v59 = vpop.eup %2903 }
 0x886   : > { %v1838_v60 = vmul.f32 %v2904_v59, %v2896_v42  ;;  %v2808_v26 = vpop.permute.xlu2 %2807  ;;  %2214 = vmatpush.bf16.msra.mxu1 %v2613_v4 }
 0x887   : > { %v2810_v27 = vunpack.i.h.bf16 %v2808_v26  ;;  %v2809_v5 = vunpack.i.l.bf16 %v2808_v26 }
 0x888   : > { %v1842_v2 = vpack.c.bf16 %v1838_v60, %v1838_v60  ;;  %v2793_v12 = vpop.permute.xlu0 %2792  ;;  %v2932_v60 = vld [vmem:[%s3353_s24 + $0x18] sm:$0xff] }
 0x889   : > { %v2795_v15 = vunpack.i.h.bf16 %v2793_v12  ;;  %v2794_v19 = vunpack.i.l.bf16 %v2793_v12  ;;  %v1978_v35 = vsel %vm837_vm10, %v3613_v37, %v2810_v27  ;;  %v1977_v38 = vsel %vm837_vm10, %v3605_v20, %v2809_v5  ;;  %v2929_v37 = vld [vmem:[%s3353_s24] sm:$0xff] }
 0x88b   : > { %v1976_v23 = vsel %vm837_vm10, %v3607_v22, %v2795_v15  ;;  %v1975_v61 = vsel %vm837_vm10, %v3603_v18, %v2794_v19  ;;  %v2612_v19 = vld [vmem:[#allocation10] sm:$0xff] }
 0x88c   : > { %v1980_v13 = vsel %vm1979_vm13, %v1975_v61, %v2799_v49  ;;  %v1981_v25 = vsel %vm1979_vm13, %v1976_v23, %v2800_v17  ;;  %2215 = vmatpush.bf16.msra.mxu1 %v2612_v19  ;;  %v2822_v19 = vld [vmem:[%s3924_s7] ss:$0 sm:$0xff] }
 0x896   : > { %v1907_v62 = vpop.permute.xlu1 %1906 }
 0x897   : > { %v1912_v63 = vsel %vm982_vm12, %v1907_v62, 0 }
 0x898   : > { %1921 = vmatpush.bf16.msra.mxu2 %v1912_v63 }
 0x89b   : > { %2558 = vmatmul.msk.bf16.vlgmr.msra.gmra.mxu2 %vm837_vm10, %v1842_v2 }
 0x8f7   : > { %v1860_v0 = vpop.f32.mrf.mxu0 }
 0x8ff   : > { %v1862_v3 = vpop.f32.mrf.mxu0  ;;  %v1902_v6 = vpop.f32.mrf.mxu3 }
 0x902   : > { %v1881_v7 = vpop.f32.mrf.mxu1 }
 0x903   : > { %v2801_v8 = vpack.i.bf16 %v1881_v7, %v1860_v0 }
 0x905   : > { %2802 = vrot.lane.b32.xlu0 %v2801_v8, %s3182_s29 }
 0x907   : > { %v1904_v10 = vpop.f32.mrf.mxu3 }
 0x90a   : > { %v1883_v36 = vpop.f32.mrf.mxu1 }
 0x90d   : > { %2812 = vrot.lane.b32.xlu0 %v2811_v54, %s3181_s28  ;;  %s486_s28 = scalar_lea.vmem [#allocation11], %s2480_s26 }
 0x90e   : > { %s2351_s23 = sshll.u32 %s486_s28, 4  ;;  %s2352_s23 = int_to_ptr.vmem [resolvable:$true] %s2351_s23 }
 0x91e   : > { %v1923_v41 = vpop.f32.mrf.mxu2 }
 0x91f   : > { %v2816_v11 = vpack.i.bf16 %v1923_v41, %v1902_v6 }
 0x921   : > { %2817 = vrot.lane.b32.xlu2 %v2816_v11, %s3182_s29  ;;  %s2618_s29 = sshll.u32 %s3270_s25, 5 }
 0x922   : > { %s2350_s3 = scalar_lea.hbm %s3962_s20, %s2618_s29 }
 0x923   : > { %s2353_s27 = sshll.u32 %s2350_s3, 4  ;;  %s2354_s27 = int_to_ptr.hbm [resolvable:$true] %s2353_s27 }
 0x924   : > { %s3097_s25 = sshra.s32 %s2354_s27, 4  ;;  %s3098_s25 = int_to_ptr.hbm [resolvable:$true] %s3097_s25 }
 0x925   : > { %s3099_s19 = scalar_lea.hbm %s3098_s25, 32  ;;  %p3104_p3 = scmp.lt.s32.totalorder %s3098_s25, %s3962_s20 }
 0x926   : > { %v1925_v1 = vpop.f32.mrf.mxu2  ;;  %p3100_p0 = scmp.ne.s32.totalorder %s3098_s25, %s3099_s19  ;;  %p3105_p4 = scmp.lt.s32.totalorder %s3103_s12, %s3099_s19 }
 0x928   : > { %p3101_p1 = pnand %p3100_p0, %p3287_p5  ;;  %p3106_p7 = por %p3105_p4, %p3104_p3 }
 0x92a   : > { %p3102_p2 = pneg %p3101_p1 }
 0x92c   : > { %p3107_p8 = pnand %p3106_p7, %p3102_p2 }
 0x977   : > { %v2803_v53 = vpop.permute.xlu0 %2802 }
 0x978   : > { %v2805_v54 = vunpack.i.h.bf16 %v2803_v53  ;;  %v2804_v24 = vunpack.i.l.bf16 %v2803_v53 }
 0x97a   : > { %v1985_v16 = vsel %vm1984_vm14, %v1980_v13, %v2804_v24  ;;  %v1986_v21 = vsel %vm1984_vm14, %v1981_v25, %v2805_v54 }
 0x97b   : > { %v1989_v22 = vpack.c.bf16 %v1986_v21, %v1985_v16  ;;  %v2818_v30 = vpop.permute.xlu2 %2817 }
 0x97c   : > { %v2820_v45 = vunpack.i.h.bf16 %v2818_v30  ;;  %v2819_v32 = vunpack.i.l.bf16 %v2818_v30 }
 0x97d   : > { %2567 = vmatmul.msk.bf16.vlgmr.msrb.gmra.mxu0 %vm504_vm0, %v1989_v22 }
 0x97f   : > { %v2813_v18 = vpop.permute.xlu0 %2812 }
 0x980   : > { %v2815_v28 = vunpack.i.h.bf16 %v2813_v18  ;;  %v2814_v29 = vunpack.i.l.bf16 %v2813_v18 }
 0x982   : > { %v1983_v43 = vsel %vm1979_vm13, %v1978_v35, %v2815_v28  ;;  %v1982_v42 = vsel %vm1979_vm13, %v1977_v38, %v2814_v29 }
 0x983   : > { %v1987_v40 = vsel %vm1984_vm14, %v1982_v42, %v2819_v32  ;;  %v1988_v39 = vsel %vm1984_vm14, %v1983_v43, %v2820_v45 }
 0x984   : > { %v1990_v33 = vpack.c.bf16 %v1988_v39, %v1987_v40 }
 0x98d   : > { %2568 = vmatmul.msk.bf16.gmra.mxu0 %vm504_vm0, %v1990_v33 }
 0x9fa   : > { %v2022_v34 = vpop.f32.mrf.mxu0 }
 0x9fb   : > { %v3824_v46 = vadd.f32 %v2929_v37, %v2022_v34 }
 0x9fd   : > { %v2037_v20 = vmul.f32 %v3824_v46, %v3824_v46 }
 0x9ff   : > { %v2041_v51 = vsel %vm504_vm0, %v2037_v20, 0.0 }
 0xa00   : > { %2042 = vadd.xlane.f32.xlu0 %v2041_v51 }
 0xa02   : > { %v2024_v44 = vpop.f32.mrf.mxu0 }
 0xa03   : > { %v3830_v50 = vadd.f32 %v2930_v52, %v2024_v44 }
 0xa05   : > { %v2038_v57 = vmul.f32 %v3830_v50, %v3830_v50 }
 0xa07   : > { %v2044_v47 = vsel %vm504_vm0, %v2038_v57, 0.0 }
 0xa08   : > { %2045 = vadd.xlane.f32.xlu1 %v2044_v47 }
 0xa0a   : > { %v2027_v31 = vpop.f32.mrf.mxu0 }
 0xa0b   : > { %v3836_v55 = vadd.f32 %v2931_v48, %v2027_v31 }
 0xa0d   : > { %v2039_v56 = vmul.f32 %v3836_v55, %v3836_v55 }
 0xa0f   : > { %v2047_v58 = vsel %vm504_vm0, %v2039_v56, 0.0 }
 0xa10   : > { %2048 = vadd.xlane.f32.xlu2 %v2047_v58 }
 0xa12   : > { %v2029_v59 = vpop.f32.mrf.mxu0 }
 0xa13   : > { %v3842_v62 = vadd.f32 %v2932_v60, %v2029_v59 }
 0xa15   : > { %v2040_v63 = vmul.f32 %v3842_v62, %v3842_v62 }
 0xa17   : > { %v2050_v2 = vsel %vm504_vm0, %v2040_v63, 0.0 }
 0xa18   : > { %2051 = vadd.xlane.f32.xlu0 %v2050_v2 }
 0xa73   : > { %v2043_v0 = vpop.xlane.xlu0 %2042 }
 0xa74   : > { %2905 = vrsqrt.f32 %v2043_v0  ;;  %vm2060_vm15 = vcmp.eq.f32.partialorder %v2043_v0, inf  ;;  %v2063_v15 = vand.u32 2147483648, %v2043_v0  ;;  %vm2062_vm1 = vcmp.eq.f32.partialorder %v2043_v0, 0.0 }
 0xa7a   : > { %v2906_v3 = vpop.eup %2905 }
 0xa7b   : > { %v2054_v6 = vmul.f32 %v2906_v3, %v2043_v0  ;;  %v2046_v7 = vpop.xlane.xlu1 %2045 }
 0xa7c   : > { %2907 = vrsqrt.f32 %v2046_v7  ;;  %vm2072_vm2 = vcmp.eq.f32.partialorder %v2046_v7, inf  ;;  %v2075_v22 = vand.u32 2147483648, %v2046_v7  ;;  %vm2074_vm3 = vcmp.eq.f32.partialorder %v2046_v7, 0.0 }
 0xa7d   : > { %v2055_v8 = vmul.f32 %v2906_v3, %v2054_v6 }
 0xa7f   : > { %v2056_v9 = vmul.f32 0.5, %v2055_v8 }
 0xa81   : > { %v2057_v10 = vsub.f32 1.5, %v2056_v9 }
 0xa82   : > { %v2908_v36 = vpop.eup %2907 }
 0xa83   : > { %v2058_v41 = vmul.f32 %v2906_v3, %v2057_v10  ;;  %v2066_v11 = vmul.f32 %v2908_v36, %v2046_v7  ;;  %v2049_v1 = vpop.xlane.xlu2 %2048 }
 0xa84   : > { %2909 = vrsqrt.f32 %v2049_v1  ;;  %vm2084_vm4 = vcmp.eq.f32.partialorder %v2049_v1, inf  ;;  %v2087_v39 = vand.u32 2147483648, %v2049_v1  ;;  %vm2086_vm5 = vcmp.eq.f32.partialorder %v2049_v1, 0.0 }
 0xa85   : > { %v2059_v12 = vmul.f32 %v2058_v41, %v2043_v0  ;;  %v2067_v14 = vmul.f32 %v2908_v36, %v2066_v11 }
 0xa87   : > { %v2061_v23 = vsel %vm2060_vm15, %v2043_v0, %v2059_v12  ;;  %v2068_v61 = vmul.f32 0.5, %v2067_v14 }
 0xa88   : > { %v2064_v17 = vsel %vm2062_vm1, %v2063_v15, %v2061_v23 }
 0xa89   : > { %v2101_v49 = vmul.f32 0.17677669, %v2064_v17  ;;  %v2069_v53 = vsub.f32 1.5, %v2068_v61 }
 0xa8a   : > { %v2910_v54 = vpop.eup %2909 }
 0xa8b   : > { %v2105_v24 = vadd.f32 1e-08, %v2101_v49  ;;  %v2070_v13 = vmul.f32 %v2908_v36, %v2069_v53  ;;  %v2078_v25 = vmul.f32 %v2910_v54, %v2049_v1  ;;  %v2052_v16 = vpop.xlane.xlu0 %2051 }
 0xa8c   : > { %2911 = vrsqrt.f32 %v2052_v16  ;;  %vm2096_vm8 = vcmp.eq.f32.partialorder %v2052_v16, inf  ;;  %vm2098_vm10 = vcmp.eq.f32.partialorder %v2052_v16, 0.0  ;;  %v2099_v63 = vand.u32 2147483648, %v2052_v16 }
 0xa8d   : > { %2913 = vrcp.f32 %v2105_v24  ;;  %v2071_v21 = vmul.f32 %v2070_v13, %v2046_v7  ;;  %v2079_v26 = vmul.f32 %v2910_v54, %v2078_v25  ;;  %v2118_v56 = vand.u32 2147483647, %v2105_v24 }
 0xa8e   : > { %v2120_v58 = vand.u32 2147483648, %v2105_v24  ;;  %vm2114_vm7 = vweird.f32 %v2105_v24 }
 0xa8f   : > { %v2073_v18 = vsel %vm2072_vm2, %v2046_v7, %v2071_v21  ;;  %v2080_v27 = vmul.f32 0.5, %v2079_v26  ;;  %vm2119_vm12 = vcmp.eq.f32.partialorder %v2118_v56, 8.507059e+37 }
 0xa90   : > { %v2076_v5 = vsel %vm2074_vm3, %v2075_v22, %v2073_v18  ;;  %v2121_v6 = vor.u32 1.1754944e-38, %v2120_v58 }
 0xa91   : > { %v2102_v28 = vmul.f32 0.17677669, %v2076_v5  ;;  %v2081_v29 = vsub.f32 1.5, %v2080_v27 }
 0xa92   : > { %v2912_v30 = vpop.eup %2911 }
 0xa93   : > { %v2914_v35 = vpop.eup %2913  ;;  %v2106_v38 = vadd.f32 1e-08, %v2102_v28  ;;  %v2082_v43 = vmul.f32 %v2910_v54, %v2081_v29  ;;  %v2090_v42 = vmul.f32 %v2912_v30, %v2052_v16 }
 0xa94   : > { %v2110_v45 = vmul.f32 %v2914_v35, %v2105_v24  ;;  %vm2115_vm6 = vweird.f32 %v2914_v35 }
 0xa95   : > { %2915 = vrcp.f32 %v2106_v38  ;;  %v2083_v32 = vmul.f32 %v2082_v43, %v2049_v1  ;;  %v2091_v40 = vmul.f32 %v2912_v30, %v2090_v42  ;;  %vm2116_vm9 = vmor %vm2114_vm7, %vm2115_vm6  ;;  %v2135_v7 = vand.u32 2147483648, %v2106_v38 }
 0xa96   : > { %v2111_v33 = vsub.f32 1.0, %v2110_v45  ;;  %v2133_v10 = vand.u32 2147483647, %v2106_v38  ;;  %vm2129_vm14 = vweird.f32 %v2106_v38 }
 0xa97   : > { %v2085_v34 = vsel %vm2084_vm4, %v2049_v1, %v2083_v32  ;;  %v2092_v37 = vmul.f32 0.5, %v2091_v40  ;;  %v2136_v12 = vor.u32 1.1754944e-38, %v2135_v7 }
 0xa98   : > { %v2088_v20 = vsel %vm2086_vm5, %v2087_v39, %v2085_v34  ;;  %v2112_v51 = vmul.f32 %v2914_v35, %v2111_v33  ;;  %vm2134_vm1 = vcmp.eq.f32.partialorder %v2133_v10, 8.507059e+37 }
 0xa99   : > { %v2103_v44 = vmul.f32 0.17677669, %v2088_v20  ;;  %v2093_v52 = vsub.f32 1.5, %v2092_v37  ;;  %v2617_v37 = vld [vmem:[%s3927_s10 + $0x18] sm:$0xff]  ;;  %v2616_v20 = vld [vmem:[%s3927_s10 + $0x10] sm:$0xff] }
 0xa9a   : > { %v2113_v57 = vadd.f32 %v2914_v35, %v2112_v51  ;;  %2307 = vmatpush.bf16.msrb.mxu3 %v2617_v37  ;;  %v2615_v51 = vld [vmem:[%s3927_s10 + $0x8] sm:$0xff] }
 0xa9b   : > { %v2916_v47 = vpop.eup %2915  ;;  %v2107_v31 = vadd.f32 1e-08, %v2103_v44  ;;  %v2094_v48 = vmul.f32 %v2912_v30, %v2093_v52  ;;  %v2823_v44 = vld [vmem:[%s3926_s9] ss:$0 sm:$0xff] }
 0xa9c   : > { %v2125_v59 = vmul.f32 %v2916_v47, %v2106_v38  ;;  %v2117_v2 = vsel %vm2116_vm9, %v2914_v35, %v2113_v57  ;;  %vm2130_vm13 = vweird.f32 %v2916_v47  ;;  %v2614_v52 = vld [vmem:[%s3927_s10] sm:$0xff] }
 0xa9d   : > { %2917 = vrcp.f32 %v2107_v31  ;;  %v2095_v60 = vmul.f32 %v2094_v48, %v2052_v16  ;;  %v2122_v41 = vsel %vm2119_vm12, %v2121_v6, %v2117_v2  ;;  %vm2131_vm15 = vmor %vm2129_vm14, %vm2130_vm13  ;;  %v2150_v21 = vand.u32 2147483648, %v2107_v31 }
 0xa9e   : > { %v2126_v0 = vsub.f32 1.0, %v2125_v59  ;;  %v2169_v15 = vmul.f32 %v2122_v41, %v3824_v46  ;;  %vm2144_vm3 = vweird.f32 %v2107_v31  ;;  %v2148_v26 = vand.u32 2147483647, %v2107_v31  ;;  %2308 = vmatpush.bf16.msrb.mxu3 %v2616_v20 }
 0xa9f   : > { %v2097_v3 = vsel %vm2096_vm8, %v2052_v16, %v2095_v60  ;;  %v2151_v5 = vor.u32 1.1754944e-38, %v2150_v21 }
 0xaa0   : > { %v2100_v8 = vsel %vm2098_vm10, %v2099_v63, %v2097_v3  ;;  %v2127_v9 = vmul.f32 %v2916_v47, %v2126_v0  ;;  %v2176_v53 = vmul.f32 %v2822_v19, %v2169_v15  ;;  %vm2149_vm5 = vcmp.eq.f32.partialorder %v2148_v26, 8.507059e+37 }
 0xaa1   : > { %v2104_v36 = vmul.f32 0.17677669, %v2100_v8 }
 0xaa2   : > { %v2128_v11 = vadd.f32 %v2916_v47, %v2127_v9  ;;  %2309 = vmatpush.bf16.msrb.mxu3 %v2615_v51 }
 0xaa3   : > { %v2918_v1 = vpop.eup %2917  ;;  %v2108_v4 = vadd.f32 1e-08, %v2104_v36 }
 0xaa4   : > { %v2132_v14 = vsel %vm2131_vm15, %v2916_v47, %v2128_v11  ;;  %v2140_v23 = vmul.f32 %v2918_v1, %v2107_v31  ;;  %vm2145_vm2 = vweird.f32 %v2918_v1 }
 0xaa5   : > { %2919 = vrcp.f32 %v2108_v4  ;;  %v2137_v61 = vsel %vm2134_vm1, %v2136_v12, %v2132_v14  ;;  %vm2146_vm4 = vmor %vm2144_vm3, %vm2145_vm2  ;;  %v2165_v28 = vand.u32 2147483648, %v2108_v4  ;;  %v2163_v30 = vand.u32 2147483647, %v2108_v4 }
 0xaa6   : > { %v2170_v17 = vmul.f32 %v2137_v61, %v3830_v50  ;;  %v2141_v49 = vsub.f32 1.0, %v2140_v23  ;;  %vm2159_vm7 = vweird.f32 %v2108_v4  ;;  %2310 = vmatpush.bf16.msrb.mxu3 %v2614_v52 }
 0xaa7   : > { %v2166_v43 = vor.u32 1.1754944e-38, %v2165_v28  ;;  %vm2164_vm9 = vcmp.eq.f32.partialorder %v2163_v30, 8.507059e+37 }
 0xaa8   : > { %v2177_v54 = vmul.f32 %v2822_v19, %v2170_v17  ;;  %v2142_v24 = vmul.f32 %v2918_v1, %v2141_v49 }
 0xaaa   : > { %v2180_v13 = vpack.c.bf16 %v2177_v54, %v2176_v53  ;;  %v2143_v25 = vadd.f32 %v2918_v1, %v2142_v24 }
 0xaab   : > { %v2920_v16 = vpop.eup %2919 }
 0xaac   : > { %2577 = vmatmul.msk.bf16.vlgmr.msra.gmra.mxu1 %vm504_vm0, %v2180_v13  ;;  %v2155_v22 = vmul.f32 %v2920_v16, %v2108_v4  ;;  %v2147_v18 = vsel %vm2146_vm4, %v2918_v1, %v2143_v25  ;;  %vm2160_vm6 = vweird.f32 %v2920_v16 }
 0xaad   : > { %v2152_v35 = vsel %vm2149_vm5, %v2151_v5, %v2147_v18  ;;  %vm2161_vm8 = vmor %vm2159_vm7, %vm2160_vm6 }
 0xaae   : > { %v2156_v27 = vsub.f32 1.0, %v2155_v22  ;;  %v2171_v45 = vmul.f32 %v2152_v35, %v3836_v55 }
 0xab0   : > { %v2157_v29 = vmul.f32 %v2920_v16, %v2156_v27  ;;  %v2178_v39 = vmul.f32 %v2822_v19, %v2171_v45 }
 0xab2   : > { %v2158_v38 = vadd.f32 %v2920_v16, %v2157_v29 }
 0xab4   : > { %v2162_v42 = vsel %vm2161_vm8, %v2920_v16, %v2158_v38  ;;  %v2824_v38 = vld [vmem:[%s3928_s11] ss:$0 sm:$0xff] }
 0xab5   : > { %v2167_v32 = vsel %vm2164_vm9, %v2166_v43, %v2162_v42 }
 0xab6   : > { %v2172_v40 = vmul.f32 %v2167_v32, %v3842_v62 }
 0xab8   : > { %v2179_v33 = vmul.f32 %v2822_v19, %v2172_v40 }
 0xaba   : > { %v2181_v34 = vpack.c.bf16 %v2179_v33, %v2178_v39 }
 0xabc   : > { %2578 = vmatmul.msk.bf16.gmra.mxu1 %vm504_vm0, %v2181_v34 }
 0xb29   : > { %v2217_v57 = vpop.f32.mrf.mxu1 }
 0xb2a   : > { %v2218_v47 = vadd.f32 %v2823_v44, %v2217_v57 }
 0xb2c   : > { %v2231_v31 = vmul.f32 0.044715, %v2218_v47  ;;  %v2227_v23 = vmul.f32 0.5, %v2218_v47 }
 0xb2e   : > { %v2235_v48 = vmul.f32 %v2231_v31, %v2218_v47 }
 0xb30   : > { %v2239_v56 = vmul.f32 %v2235_v48, %v2218_v47 }
 0xb31   : > { %v2219_v58 = vpop.f32.mrf.mxu1 }
 0xb32   : > { %v2243_v59 = vadd.f32 %v2239_v56, %v2218_v47  ;;  %v2220_v60 = vadd.f32 %v2823_v44, %v2219_v58 }
 0xb34   : > { %v2232_v63 = vmul.f32 0.044715, %v2220_v60  ;;  %v2247_v2 = vmul.f32 0.7978846, %v2243_v59  ;;  %v2228_v61 = vmul.f32 0.5, %v2220_v60 }
 0xb36   : > { %v2236_v0 = vmul.f32 %v2232_v63, %v2220_v60  ;;  %2921 = vtanh.f32 %v2247_v2 }
 0xb38   : > { %v2240_v3 = vmul.f32 %v2236_v0, %v2220_v60 }
 0xb39   : > { %v2222_v6 = vpop.f32.mrf.mxu1 }
 0xb3a   : > { %v2244_v7 = vadd.f32 %v2240_v3, %v2220_v60  ;;  %v2223_v8 = vadd.f32 %v2823_v44, %v2222_v6 }
 0xb3c   : > { %v2248_v9 = vmul.f32 0.7978846, %v2244_v7  ;;  %v2233_v10 = vmul.f32 0.044715, %v2223_v8  ;;  %v2922_v41 = vpop.eup %2921  ;;  %v2229_v27 = vmul.f32 0.5, %v2223_v8 }
 0xb3d   : > { %v2255_v14 = vadd.f32 1.0, %v2922_v41 }
 0xb3e   : > { %2923 = vtanh.f32 %v2248_v9  ;;  %v2237_v36 = vmul.f32 %v2233_v10, %v2223_v8 }
 0xb3f   : > { %v2259_v54 = vmul.f32 %v2255_v14, %v2227_v23 }
 0xb40   : > { %v2241_v11 = vmul.f32 %v2237_v36, %v2223_v8 }
 0xb41   : > { %v2224_v1 = vpop.f32.mrf.mxu1 }
 0xb42   : > { %v2245_v4 = vadd.f32 %v2241_v11, %v2223_v8  ;;  %v2225_v12 = vadd.f32 %v2823_v44, %v2224_v1 }
 0xb44   : > { %v2924_v15 = vpop.eup %2923  ;;  %v2234_v19 = vmul.f32 0.044715, %v2225_v12  ;;  %v2249_v49 = vmul.f32 0.7978846, %v2245_v4  ;;  %v2230_v5 = vmul.f32 0.5, %v2225_v12 }
 0xb45   : > { %v2256_v17 = vadd.f32 1.0, %v2924_v15 }
 0xb46   : > { %v2238_v53 = vmul.f32 %v2234_v19, %v2225_v12  ;;  %2925 = vtanh.f32 %v2249_v49 }
 0xb47   : > { %v2260_v24 = vmul.f32 %v2256_v17, %v2228_v61 }
 0xb48   : > { %v2242_v13 = vmul.f32 %v2238_v53, %v2225_v12 }
 0xb49   : > { %v2263_v25 = vpack.c.bf16 %v2260_v24, %v2259_v54 }
 0xb4a   : > { %v2246_v16 = vadd.f32 %v2242_v13, %v2225_v12 }
 0xb4b   : > { %2595 = vmatmul.msk.bf16.vlgmr.msrb.gmra.mxu3 %vm806_vm11, %v2263_v25 }
 0xb4c   : > { %v2250_v21 = vmul.f32 0.7978846, %v2246_v16  ;;  %v2926_v26 = vpop.eup %2925 }
 0xb4d   : > { %v2257_v22 = vadd.f32 1.0, %v2926_v26 }
 0xb4e   : > { %2927 = vtanh.f32 %v2250_v21 }
 0xb4f   : > { %v2261_v29 = vmul.f32 %v2257_v22, %v2229_v27 }
 0xb54   : > { %v2928_v18 = vpop.eup %2927 }
 0xb55   : > { %v2258_v28 = vadd.f32 1.0, %v2928_v18 }
 0xb57   : > { %v2262_v30 = vmul.f32 %v2258_v28, %v2230_v5 }
 0xb59   : > { %v2264_v35 = vpack.c.bf16 %v2262_v30, %v2261_v29 }
 0xb5b   : > { %2596 = vmatmul.msk.bf16.gmra.mxu3 %vm806_vm11, %v2264_v35 }
 0xbce   : > { %v2312_v43 = vpop.f32.mrf.mxu3 }
 0xbcf   : > { %v2322_v42 = vadd.f32 %v2312_v43, %v3824_v46 }
 0xbd1   : > { %v2330_v45 = vadd.f32 %v2824_v38, %v2322_v42 }
 0xbd3   : > { %2334 = vst.msk [vmem:[%s486_s28] sm:$0xff] %vm504_vm0, %v2330_v45 }
 0xbd6   : > { %v2314_v32 = vpop.f32.mrf.mxu3 }
 0xbd7   : > { %v2323_v40 = vadd.f32 %v2314_v32, %v3830_v50 }
 0xbd9   : > { %v2331_v39 = vadd.f32 %v2824_v38, %v2323_v40 }
 0xbdb   : > { %2335 = vst.msk [vmem:[%s486_s28 + $0x8] sm:$0xff] %vm504_vm0, %v2331_v39 }
 0xbde   : > { %v2317_v33 = vpop.f32.mrf.mxu3 }
 0xbdf   : > { %v2324_v34 = vadd.f32 %v2317_v33, %v3836_v55 }
 0xbe1   : > { %v2332_v37 = vadd.f32 %v2824_v38, %v2324_v34 }
 0xbe3   : > { %2336 = vst.msk [vmem:[%s486_s28 + $0x10] sm:$0xff] %vm504_vm0, %v2332_v37 }
 0xbe6   : > { %v2319_v46 = vpop.f32.mrf.mxu3 }
 0xbe7   : > { %v2325_v50 = vadd.f32 %v2319_v46, %v3842_v62 }
 0xbe9   : > { %v2333_v20 = vadd.f32 %v2824_v38, %v2325_v50 }
 0xbeb   : > { %2337 = vst.msk [vmem:[%s486_s28 + $0x18] sm:$0xff] %vm504_vm0, %v2333_v20 }
 0xbec   : > { %3110 = shalt.err (!%p3107_p8)
}
 0xbed   : > { %s3183_s15 = smov 128  }
 0xbee   : > { %2641 = dma.vmem_to_hbm [thread:$0]  (%p3287_p5), %s2352_s23, 512, %s2354_s27, %s2339_s30, %s3183_s15, %s3183_s15, %s3180_s16  }
 0xbef PF: > { %s3963_s17 = sld [smem:[#allocation18_spill]] }
 0xbf0   : > { %s3964_s14 = sld [smem:[#allocation16_spill]] }
 0xbf5   : > { %p2673_p9 = scmp.ge.s32.totalorder %s3963_s17, 2 }
 0xbf6   : > { %s2368_s29 = sand.u32 1, %s3964_s14  }
 0xbf7   : > { %p2660_p10 = pnand %p2673_p9, %p3291_p6  ;;  %s2369_s24 = scalar_lea.sflag [#allocation4], %s2368_s29 }
 0xbf9   : > { %p2661_p11 = pneg %p2660_p10 }
 0xbfb   : > { %3140 = dma.done.wait (%p2661_p11), %s2369_s24, 512  }
 0xbfc   : > { %3142 = vsyncadd (%p2661_p11), %s2369_s24, 4294966784  ;;  %s3966_s24 = sld [smem:[#allocation19_spill]]  ;;  %s3969_s21 = smov %s3149_s22 }
 0xbfd   : > { %s3967_s18 = sld [smem:[#allocation17_spill]] }
 0xbfe   : > { %s3968_s23 = sld [smem:[#allocation20_spill]] }
 0xc02   : > { %p25_p12 = scmp.ge.s32.totalorder %s3966_s24, 4  }
 0xc03   : > { %s3970_s22 = smov %s3967_s18 }
 0xc04   :  { %27 = sbr.rel (!%p25_p12) target bundleno = 11 (0xb), region = 124 }
 0xc09   :  { %2375 = vsyncpa [#allocation3], 1 }
 0xc0a   :  { %2377 = vsyncpa [#allocation3 + $0x1], 1 }
 0xc0b   :  { %2378 = vsyncpa [#allocation6], 1 }
 0xc0c   :  { %2379 = vsyncpa [#allocation9], 1 }
 0xc0d   :  { %2380 = vsyncpa [#allocation4], 1 }
 0xc0e   :  { %2382 = vsyncpa [#allocation4 + $0x1], 1 }

</bundles_post_ra>
